<compile_context>
chip_gen: v7x
topology: tpu7x:2x2x1
jax: 0.10.0
libtpu: 0.0.40
codegen_flags: <defaults>
</compile_context>

<pallas_src>
from functools import partial

import jax
import jax.numpy as jnp
from jax.experimental import pallas as pl
from jax.experimental.pallas import tpu as pltpu

# ----------------------------- configuration --------------------------------
D_MODEL = 32
N_HEAD = 4
DIM_FF = 64
N_LAYERS = 2
LN_EPS = 1e-5
DH = D_MODEL // N_HEAD
LANE = 128  # weight slots / bias rows are padded to one full lane group


# ------------------------------ kernel helpers -------------------------------
def _layer_norm(x, gamma, beta):
    # x: (M, D), gamma/beta: (1, D)
    # var = E[x^2] - mean^2 -> the two cross-lane reductions are independent.
    mean = jnp.mean(x, axis=-1, keepdims=True)
    meansq = jnp.mean(x * x, axis=-1, keepdims=True)
    var = meansq - mean * mean
    return (x - mean) * jax.lax.rsqrt(var + LN_EPS) * gamma + beta


# --------------------------- fused encoder kernel -----------------------------
def fused_encoder_kernel(x_ref, mats_ref, vecs_ref, o_ref, *, Bt, S):
    x = x_ref[...]  # (M, D) with M = Bt*S -- whole block of batch elements

    for l in range(N_LAYERS):  # unrolled: tiny, gives LLO full visibility
        # --- weights: one 128-lane slot per operand, all lane-0 aligned ---
        wqkv = mats_ref[l, 0]                      # (D, 128): [q*scale | k | v | 0]
        wo = mats_ref[l, 1][:, :D_MODEL]           # (D, D)
        w1 = mats_ref[l, 2]                        # (D, 128): cols 0:F live, rest 0
        w2t = mats_ref[l, 3]                       # (D, 128): w2^T, cols 0:F live

        vb = vecs_ref[l]                           # (8, 128) -- one vector per row
        bqkv = vb[0:1, :]                          # (1, 128), q-part pre-scaled
        bo = vb[1:2, 0:D_MODEL]
        b1 = vb[2:3, :]                            # (1, 128), pad lanes are zero
        b2 = vb[3:4, 0:D_MODEL]
        g1 = vb[4:5, 0:D_MODEL]
        bt1 = vb[5:6, 0:D_MODEL]
        g2 = vb[6:7, 0:D_MODEL]
        bt2 = vb[7:8, 0:D_MODEL]

        # --- multi-head self-attention (packed in_proj [q|k|v]) ---
        qkv = jnp.dot(x, wqkv, preferred_element_type=jnp.float32) + bqkv  # (M, 128)
        q = qkv[:, 0:D_MODEL]                      # scale already folded in
        k = qkv[:, D_MODEL:2 * D_MODEL]
        v = qkv[:, 2 * D_MODEL:3 * D_MODEL]

        rows = []
        for b in range(Bt):                        # per-batch S x S attention
            r0 = b * S
            heads = []
            for h in range(N_HEAD):
                lo = h * DH
                qh = q[r0:r0 + S, lo:lo + DH]      # (S, dh)
                kh = k[r0:r0 + S, lo:lo + DH]
                vh = v[r0:r0 + S, lo:lo + DH]
                # q @ k^T without an explicit transpose (contract last dims)
                s = jax.lax.dot_general(qh, kh, (((1,), (1,)), ((), ())),
                                        preferred_element_type=jnp.float32)
                s = s - jnp.max(s, axis=-1, keepdims=True)
                p = jnp.exp(s)
                denom = jnp.sum(p, axis=-1, keepdims=True)
                p = p * pl.reciprocal(denom, approx=False)  # exact: f32 parity
                heads.append(jnp.dot(p, vh, preferred_element_type=jnp.float32))
            rows.append(jnp.concatenate(heads, axis=-1))    # (S, D) lane concat
        attn_cat = jnp.concatenate(rows, axis=0)             # (M, D)
        # single aligned output projection against full Wo
        attn = jnp.dot(attn_cat, wo, preferred_element_type=jnp.float32) + bo

        # --- residual + norm1 ---
        x1 = _layer_norm(x + attn, g1, bt1)

        # --- feed-forward (ReLU); padded columns are zero everywhere ---
        hdn = jnp.dot(x1, w1, preferred_element_type=jnp.float32) + b1   # (M, 128)
        hdn = jnp.maximum(hdn, 0.0)
        ffn = jax.lax.dot_general(hdn, w2t, (((1,), (1,)), ((), ())),
                                  preferred_element_type=jnp.float32) + b2  # (M, D)

        # --- residual + norm2 ---
        x = _layer_norm(x1 + ffn, g2, bt2)

    # --- final container LayerNorm (applied to output[0]) ---
    vf = vecs_ref[N_LAYERS]
    gf = vf[0:1, 0:D_MODEL]
    bf = vf[1:2, 0:D_MODEL]
    o_ref[...] = _layer_norm(x, gf, bf)


# ------------------------------ Pallas wrapper --------------------------------
def _default_num_blocks(batch):
    # v7x exposes 2 TensorCores per chip: shard the batch across them.
    # v5e/v6e (single TC): collapse to one grid step -> pay the ~0.35us
    # per-step overhead exactly once.
    try:
        n_tc = int(getattr(jax.devices()[0], "num_cores", 1) or 1)
    except Exception:
        n_tc = 1
    n = max(1, min(n_tc, batch))
    while batch % n:
        n -= 1
    return n


def _cost_estimate(B, S, D):
    ms = B * S
    mm = 0
    mm += 2 * ms * D * (3 * D)          # qkv projection
    mm += 4 * B * S * S * D             # scores + p@v over all heads
    mm += 2 * ms * D * D                # output projection
    mm += 4 * ms * D * DIM_FF           # two FFN matmuls
    flops = N_LAYERS * mm
    transcendentals = (N_LAYERS * B * N_HEAD * S * S      # exp
                       + N_LAYERS * B * N_HEAD * S        # softmax reciprocal
                       + (2 * N_LAYERS + 1) * ms)          # LayerNorm rsqrt
    bytes_accessed = (2 * ms * D * 4
                      + N_LAYERS * 4 * D * LANE * 4
                      + (N_LAYERS + 1) * 8 * LANE * 4)
    return pl.CostEstimate(flops=flops, transcendentals=transcendentals,
                           bytes_accessed=bytes_accessed)


def run_fused_encoder(x, mats, vecs, *, num_blocks=None):
    B, S, D = x.shape
    if num_blocks is None:
        num_blocks = _default_num_blocks(B)
    Bt = B // num_blocks
    M = Bt * S                           # rows per grid step (multiple of 8)

    x2 = x.reshape(B * S, D)             # fold batch into the sublane/M axis

    out2 = pl.pallas_call(
        partial(fused_encoder_kernel, Bt=Bt, S=S),
        out_shape=jax.ShapeDtypeStruct((B * S, D), jnp.float32),
        grid=(num_blocks,),
        in_specs=[
            pl.BlockSpec((M, D), lambda i: (i, 0)),
            pl.BlockSpec(mats.shape, lambda i: (0, 0, 0, 0)),  # resident weights
            pl.BlockSpec(vecs.shape, lambda i: (0, 0, 0)),     # resident vectors
        ],
        out_specs=pl.BlockSpec((M, D), lambda i: (i, 0)),
        compiler_params=pltpu.CompilerParams(dimension_semantics=("parallel",)),
        cost_estimate=_cost_estimate(B, S, D),
    )(x2, mats, vecs)
    return out2.reshape(B, S, D)


# --------------------------- TransformerEncoder ------------------------------
def transformer_encoder_forward(src, mask=None, src_key_padding_mask=None,
                                clusters=None, pos=None, *, mats, vecs):
    # mirrors: output = src; for layer in layers: output = layer(output, ...);
    #          if norm: output = (norm(output[0]), output[1])
    # The per-layer loop and the final norm are fused into a single kernel;
    # cluster info is passed through unchanged (as output[1]).
    # TODO(synk): masks / pos / dropout not applied (None / eval-mode path).
    feats = run_fused_encoder(src, mats, vecs)
    return feats, clusters


# --------------------------- deterministic params ----------------------------
def init_params(key):
    layer_params = []
    std = 0.02
    for l in range(N_LAYERS):
        k = jax.random.fold_in(key, l)
        ks = jax.random.split(k, 8)
        layer_params.append(dict(
            wqkv=jax.random.normal(ks[0], (D_MODEL, 3 * D_MODEL), jnp.float32) * std,
            bqkv=jax.random.normal(ks[1], (1, 3 * D_MODEL), jnp.float32) * std,
            wo=jax.random.normal(ks[2], (D_MODEL, D_MODEL), jnp.float32) * std,
            bo=jax.random.normal(ks[3], (1, D_MODEL), jnp.float32) * std,
            w1=jax.random.normal(ks[4], (D_MODEL, DIM_FF), jnp.float32) * std,
            b1=jax.random.normal(ks[5], (1, DIM_FF), jnp.float32) * std,
            w2=jax.random.normal(ks[6], (DIM_FF, D_MODEL), jnp.float32) * std,
            b2=jax.random.normal(ks[7], (1, D_MODEL), jnp.float32) * std,
            g1=jnp.ones((1, D_MODEL), jnp.float32),
            bt1=jnp.zeros((1, D_MODEL), jnp.float32),
            g2=jnp.ones((1, D_MODEL), jnp.float32),
            bt2=jnp.zeros((1, D_MODEL), jnp.float32),
        ))
    norm_params = dict(g=jnp.ones((1, D_MODEL), jnp.float32),
                       b=jnp.zeros((1, D_MODEL), jnp.float32))
    return layer_params, norm_params


def _pad_lanes(a, width=LANE):
    return jnp.pad(a, ((0, 0), (0, width - a.shape[1])))


def pack_params(layer_params, norm_params):
    """Host-side one-time packing; every operand lane-0 aligned in its slot."""
    scale = 1.0 / (DH ** 0.5)
    mats, vecs = [], []
    for p in layer_params:
        # fold the 1/sqrt(dh) attention scale into the Q columns of wqkv/bqkv
        wqkv = p["wqkv"].at[:, :D_MODEL].multiply(scale)
        bqkv = p["bqkv"].at[:, :D_MODEL].multiply(scale)
        mats.append(jnp.stack([
            _pad_lanes(wqkv),        # slot 0: [q|k|v]   (D,128)
            _pad_lanes(p["wo"]),     # slot 1: wo        (D,128)
            _pad_lanes(p["w1"]),     # slot 2: w1        (D,128)
            _pad_lanes(p["w2"].T),   # slot 3: w2^T      (D,128)
        ]))                          # (4, D, 128)
        vecs.append(jnp.concatenate([
            _pad_lanes(bqkv),        # row 0
            _pad_lanes(p["bo"]),     # row 1
            _pad_lanes(p["b1"]),     # row 2
            _pad_lanes(p["b2"]),     # row 3
            _pad_lanes(p["g1"]),     # row 4
            _pad_lanes(p["bt1"]),    # row 5
            _pad_lanes(p["g2"]),     # row 6
            _pad_lanes(p["bt2"]),    # row 7
        ], axis=0))                  # (8, 128)
    # final-LayerNorm slot
    vecs.append(jnp.concatenate([
        _pad_lanes(norm_params["g"]),
        _pad_lanes(norm_params["b"]),
        jnp.zeros((6, LANE), jnp.float32),
    ], axis=0))
    mats = jnp.stack(mats)           # (L, 4, D, 128)
    vecs = jnp.stack(vecs)           # (L+1, 8, 128)
    assert mats.shape == (N_LAYERS, 4, D_MODEL, LANE)
    assert vecs.shape == (N_LAYERS + 1, 8, LANE)
    return mats, vecs


# --------------------------- pure-JAX reference -------------------------------
def _ref_ln(x, g, b):
    mean = jnp.mean(x, axis=-1, keepdims=True)
    var = jnp.mean((x - mean) ** 2, axis=-1, keepdims=True)
    return (x - mean) / jnp.sqrt(var + LN_EPS) * g + b


def reference_forward(src, layer_params, norm_params):
    x = src
    B, S, D = x.shape
    scale = 1.0 / (DH ** 0.5)
    for p in layer_params:
        qkv = jnp.einsum("bsd,de->bse", x, p["wqkv"]) + p["bqkv"]
        q, k, v = jnp.split(qkv, 3, axis=-1)
        q = q.reshape(B, S, N_HEAD, DH).transpose(0, 2, 1, 3)
        k = k.reshape(B, S, N_HEAD, DH).transpose(0, 2, 1, 3)
        v = v.reshape(B, S, N_HEAD, DH).transpose(0, 2, 1, 3)
        s = jnp.einsum("bhqd,bhkd->bhqk", q, k) * scale
        a = jax.nn.softmax(s, axis=-1)
        o = jnp.einsum("bhqk,bhkd->bhqd", a, v).transpose(0, 2, 1, 3).reshape(B, S, D)
        attn = jnp.einsum("bsd,de->bse", o, p["wo"]) + p["bo"]
        x1 = _ref_ln(x + attn, p["g1"], p["bt1"])
        h = jax.nn.relu(jnp.einsum("bsd,df->bsf", x1, p["w1"]) + p["b1"])
        ffn = jnp.einsum("bsf,fd->bsd", h, p["w2"]) + p["b2"]
        x = _ref_ln(x1 + ffn, p["g2"], p["bt2"])
    return _ref_ln(x, norm_params["g"], norm_params["b"])


# ----------------------------------- main ------------------------------------
if __name__ == "__main__":
    B, S = 2, 8
    key = jax.random.PRNGKey(0)
    k_src, k_par = jax.random.split(key)

    src = jax.random.normal(k_src, (B, S, D_MODEL), jnp.float32)
    clusters = jnp.mod(jnp.arange(B * S, dtype=jnp.int32).reshape(B, S), 4)

    layer_params, norm_params = init_params(k_par)
    mats, vecs = pack_params(layer_params, norm_params)

    out_feats, out_clusters = transformer_encoder_forward(
        src, mask=None, src_key_padding_mask=None, clusters=clusters, pos=None,
        mats=mats, vecs=vecs)

    out_feats = jax.block_until_ready(out_feats)
    out_clusters = jax.block_until_ready(out_clusters)

    assert out_feats.shape == (B, S, D_MODEL)
    assert out_clusters.shape == (B, S)
    assert bool(jnp.all(jnp.isfinite(out_feats)))

    # parity check against a pure-JAX f32 reference of the same forward pass
    ref = jax.block_until_ready(reference_forward(src, layer_params, norm_params))
    max_err = float(jnp.max(jnp.abs(out_feats - ref)))
    assert max_err < 2e-3, f"mismatch vs reference: max|err|={max_err}"

    print("KERNEL_OK")
</pallas_src>

<mosaic_0001>
module attributes {stable_mosaic.version = 11 : i64} {
  func.func @fused_encoder_kernel(%arg0: i32, %arg1: memref<16x32xf32, #tpu.memory_space<vmem>>, %arg2: memref<2x4x32x128xf32, #tpu.memory_space<vmem>>, %arg3: memref<3x8x128xf32, #tpu.memory_space<vmem>>, %arg4: memref<16x32xf32, #tpu.memory_space<vmem>>) attributes {dimension_semantics = [#tpu.dimension_semantics<parallel>], iteration_bounds = array<i64: 1>, scalar_prefetch = 0 : i64, scratch_operands = 0 : i64, tpu.core_type = #tpu.core_type<tc>, window_params = [{transform_indices = @transform_0, window_bounds = array<i64: 16, 32>}, {pipeline_mode = #tpu.pipeline_mode<synchronous>, transform_indices = @transform_1, window_bounds = array<i64: 2, 4, 32, 128>}, {pipeline_mode = #tpu.pipeline_mode<synchronous>, transform_indices = @transform_2, window_bounds = array<i64: 3, 8, 128>}, {transform_indices = @transform_3, window_bounds = array<i64: 16, 32>}]} {
    %c0 = arith.constant 0 : index
    %c0_0 = arith.constant 0 : index
    %0 = vector.load %arg1[%c0, %c0_0] : memref<16x32xf32, #tpu.memory_space<vmem>>, vector<16x32xf32>
    %c0_1 = arith.constant 0 : index
    %c0_2 = arith.constant 0 : index
    %c0_3 = arith.constant 0 : index
    %c0_4 = arith.constant 0 : index
    %1 = vector.load %arg2[%c0_1, %c0_2, %c0_3, %c0_4] : memref<2x4x32x128xf32, #tpu.memory_space<vmem>>, vector<1x1x32x128xf32>
    %2 = vector.shape_cast %1 : vector<1x1x32x128xf32> to vector<32x128xf32>
    %c0_5 = arith.constant 0 : index
    %c1 = arith.constant 1 : index
    %c0_6 = arith.constant 0 : index
    %c0_7 = arith.constant 0 : index
    %3 = vector.load %arg2[%c0_5, %c1, %c0_6, %c0_7] : memref<2x4x32x128xf32, #tpu.memory_space<vmem>>, vector<1x1x32x128xf32>
    %4 = vector.shape_cast %3 : vector<1x1x32x128xf32> to vector<32x128xf32>
    %5 = vector.extract_strided_slice %4 {offsets = [0, 0], sizes = [32, 32], strides = [1, 1]} : vector<32x128xf32> to vector<32x32xf32>
    %c0_8 = arith.constant 0 : index
    %c2 = arith.constant 2 : index
    %c0_9 = arith.constant 0 : index
    %c0_10 = arith.constant 0 : index
    %6 = vector.load %arg2[%c0_8, %c2, %c0_9, %c0_10] : memref<2x4x32x128xf32, #tpu.memory_space<vmem>>, vector<1x1x32x128xf32>
    %7 = vector.shape_cast %6 : vector<1x1x32x128xf32> to vector<32x128xf32>
    %c0_11 = arith.constant 0 : index
    %c3 = arith.constant 3 : index
    %c0_12 = arith.constant 0 : index
    %c0_13 = arith.constant 0 : index
    %8 = vector.load %arg2[%c0_11, %c3, %c0_12, %c0_13] : memref<2x4x32x128xf32, #tpu.memory_space<vmem>>, vector<1x1x32x128xf32>
    %9 = vector.shape_cast %8 : vector<1x1x32x128xf32> to vector<32x128xf32>
    %c0_14 = arith.constant 0 : index
    %c0_15 = arith.constant 0 : index
    %c0_16 = arith.constant 0 : index
    %10 = vector.load %arg3[%c0_14, %c0_15, %c0_16] : memref<3x8x128xf32, #tpu.memory_space<vmem>>, vector<1x8x128xf32>
    %11 = vector.shape_cast %10 : vector<1x8x128xf32> to vector<8x128xf32>
    %12 = vector.extract_strided_slice %11 {offsets = [0, 0], sizes = [1, 128], strides = [1, 1]} : vector<8x128xf32> to vector<1x128xf32>
    %13 = vector.extract_strided_slice %11 {offsets = [1, 0], sizes = [1, 32], strides = [1, 1]} : vector<8x128xf32> to vector<1x32xf32>
    %14 = vector.extract_strided_slice %11 {offsets = [2, 0], sizes = [1, 128], strides = [1, 1]} : vector<8x128xf32> to vector<1x128xf32>
    %15 = vector.extract_strided_slice %11 {offsets = [3, 0], sizes = [1, 32], strides = [1, 1]} : vector<8x128xf32> to vector<1x32xf32>
    %16 = vector.extract_strided_slice %11 {offsets = [4, 0], sizes = [1, 32], strides = [1, 1]} : vector<8x128xf32> to vector<1x32xf32>
    %17 = vector.extract_strided_slice %11 {offsets = [5, 0], sizes = [1, 32], strides = [1, 1]} : vector<8x128xf32> to vector<1x32xf32>
    %18 = vector.extract_strided_slice %11 {offsets = [6, 0], sizes = [1, 32], strides = [1, 1]} : vector<8x128xf32> to vector<1x32xf32>
    %19 = vector.extract_strided_slice %11 {offsets = [7, 0], sizes = [1, 32], strides = [1, 1]} : vector<8x128xf32> to vector<1x32xf32>
    %cst = arith.constant dense<0.000000e+00> : vector<16x128xf32>
    %20 = tpu.matmul %0, %2, %cst {dimension_numbers = #tpu.dot_dimension_numbers<[1], [0], [0], [1], [0, 0, 1, 1], [], []>} : vector<16x32xf32>, vector<32x128xf32>, vector<16x128xf32> -> vector<16x128xf32>
    %21 = vector.broadcast %12 : vector<1x128xf32> to vector<16x128xf32>
    %22 = arith.addf %20, %21 : vector<16x128xf32>
    %23 = vector.extract_strided_slice %22 {offsets = [0, 0], sizes = [16, 32], strides = [1, 1]} : vector<16x128xf32> to vector<16x32xf32>
    %24 = vector.extract_strided_slice %22 {offsets = [0, 32], sizes = [16, 32], strides = [1, 1]} : vector<16x128xf32> to vector<16x32xf32>
    %25 = vector.extract_strided_slice %22 {offsets = [0, 64], sizes = [16, 32], strides = [1, 1]} : vector<16x128xf32> to vector<16x32xf32>
    %26 = vector.extract_strided_slice %23 {offsets = [0, 0], sizes = [8, 8], strides = [1, 1]} : vector<16x32xf32> to vector<8x8xf32>
    %27 = vector.extract_strided_slice %24 {offsets = [0, 0], sizes = [8, 8], strides = [1, 1]} : vector<16x32xf32> to vector<8x8xf32>
    %28 = vector.extract_strided_slice %25 {offsets = [0, 0], sizes = [8, 8], strides = [1, 1]} : vector<16x32xf32> to vector<8x8xf32>
    %cst_17 = arith.constant dense<0.000000e+00> : vector<8x8xf32>
    %29 = tpu.matmul %26, %27, %cst_17 {dimension_numbers = #tpu.dot_dimension_numbers<[1], [1], [0], [0], [0, 0, 1, 0], [], []>} : vector<8x8xf32>, vector<8x8xf32>, vector<8x8xf32> -> vector<8x8xf32>
    %cst_18 = arith.constant dense<0xFF800000> : vector<8xf32>
    %30 = vector.multi_reduction <maximumf>, %29, %cst_18 [1] : vector<8x8xf32> to vector<8xf32>
    %31 = vector.shape_cast %30 : vector<8xf32> to vector<8x1xf32>
    %32 = vector.broadcast %31 : vector<8x1xf32> to vector<8x8xf32>
    %33 = arith.subf %29, %32 : vector<8x8xf32>
    %34 = math.exp %33 : vector<8x8xf32>
    %cst_19 = arith.constant dense<0.000000e+00> : vector<8xf32>
    %35 = vector.multi_reduction <add>, %34, %cst_19 [1] : vector<8x8xf32> to vector<8xf32>
    %36 = vector.shape_cast %35 : vector<8xf32> to vector<8x1xf32>
    %37 = tpu.reciprocal %36 : vector<8x1xf32> -> vector<8x1xf32>
    %38 = vector.broadcast %37 : vector<8x1xf32> to vector<8x8xf32>
    %39 = arith.mulf %34, %38 : vector<8x8xf32>
    %cst_20 = arith.constant dense<0.000000e+00> : vector<8x8xf32>
    %40 = tpu.matmul %39, %28, %cst_20 {dimension_numbers = #tpu.dot_dimension_numbers<[1], [0], [0], [1], [0, 0, 1, 1], [], []>} : vector<8x8xf32>, vector<8x8xf32>, vector<8x8xf32> -> vector<8x8xf32>
    %41 = vector.extract_strided_slice %23 {offsets = [0, 8], sizes = [8, 8], strides = [1, 1]} : vector<16x32xf32> to vector<8x8xf32>
    %42 = vector.extract_strided_slice %24 {offsets = [0, 8], sizes = [8, 8], strides = [1, 1]} : vector<16x32xf32> to vector<8x8xf32>
    %43 = vector.extract_strided_slice %25 {offsets = [0, 8], sizes = [8, 8], strides = [1, 1]} : vector<16x32xf32> to vector<8x8xf32>
    %cst_21 = arith.constant dense<0.000000e+00> : vector<8x8xf32>
    %44 = tpu.matmul %41, %42, %cst_21 {dimension_numbers = #tpu.dot_dimension_numbers<[1], [1], [0], [0], [0, 0, 1, 0], [], []>} : vector<8x8xf32>, vector<8x8xf32>, vector<8x8xf32> -> vector<8x8xf32>
    %cst_22 = arith.constant dense<0xFF800000> : vector<8xf32>
    %45 = vector.multi_reduction <maximumf>, %44, %cst_22 [1] : vector<8x8xf32> to vector<8xf32>
    %46 = vector.shape_cast %45 : vector<8xf32> to vector<8x1xf32>
    %47 = vector.broadcast %46 : vector<8x1xf32> to vector<8x8xf32>
    %48 = arith.subf %44, %47 : vector<8x8xf32>
    %49 = math.exp %48 : vector<8x8xf32>
    %cst_23 = arith.constant dense<0.000000e+00> : vector<8xf32>
    %50 = vector.multi_reduction <add>, %49, %cst_23 [1] : vector<8x8xf32> to vector<8xf32>
    %51 = vector.shape_cast %50 : vector<8xf32> to vector<8x1xf32>
    %52 = tpu.reciprocal %51 : vector<8x1xf32> -> vector<8x1xf32>
    %53 = vector.broadcast %52 : vector<8x1xf32> to vector<8x8xf32>
    %54 = arith.mulf %49, %53 : vector<8x8xf32>
    %cst_24 = arith.constant dense<0.000000e+00> : vector<8x8xf32>
    %55 = tpu.matmul %54, %43, %cst_24 {dimension_numbers = #tpu.dot_dimension_numbers<[1], [0], [0], [1], [0, 0, 1, 1], [], []>} : vector<8x8xf32>, vector<8x8xf32>, vector<8x8xf32> -> vector<8x8xf32>
    %56 = vector.extract_strided_slice %23 {offsets = [0, 16], sizes = [8, 8], strides = [1, 1]} : vector<16x32xf32> to vector<8x8xf32>
    %57 = vector.extract_strided_slice %24 {offsets = [0, 16], sizes = [8, 8], strides = [1, 1]} : vector<16x32xf32> to vector<8x8xf32>
    %58 = vector.extract_strided_slice %25 {offsets = [0, 16], sizes = [8, 8], strides = [1, 1]} : vector<16x32xf32> to vector<8x8xf32>
    %cst_25 = arith.constant dense<0.000000e+00> : vector<8x8xf32>
    %59 = tpu.matmul %56, %57, %cst_25 {dimension_numbers = #tpu.dot_dimension_numbers<[1], [1], [0], [0], [0, 0, 1, 0], [], []>} : vector<8x8xf32>, vector<8x8xf32>, vector<8x8xf32> -> vector<8x8xf32>
    %cst_26 = arith.constant dense<0xFF800000> : vector<8xf32>
    %60 = vector.multi_reduction <maximumf>, %59, %cst_26 [1] : vector<8x8xf32> to vector<8xf32>
    %61 = vector.shape_cast %60 : vector<8xf32> to vector<8x1xf32>
    %62 = vector.broadcast %61 : vector<8x1xf32> to vector<8x8xf32>
    %63 = arith.subf %59, %62 : vector<8x8xf32>
    %64 = math.exp %63 : vector<8x8xf32>
    %cst_27 = arith.constant dense<0.000000e+00> : vector<8xf32>
    %65 = vector.multi_reduction <add>, %64, %cst_27 [1] : vector<8x8xf32> to vector<8xf32>
    %66 = vector.shape_cast %65 : vector<8xf32> to vector<8x1xf32>
    %67 = tpu.reciprocal %66 : vector<8x1xf32> -> vector<8x1xf32>
    %68 = vector.broadcast %67 : vector<8x1xf32> to vector<8x8xf32>
    %69 = arith.mulf %64, %68 : vector<8x8xf32>
    %cst_28 = arith.constant dense<0.000000e+00> : vector<8x8xf32>
    %70 = tpu.matmul %69, %58, %cst_28 {dimension_numbers = #tpu.dot_dimension_numbers<[1], [0], [0], [1], [0, 0, 1, 1], [], []>} : vector<8x8xf32>, vector<8x8xf32>, vector<8x8xf32> -> vector<8x8xf32>
    %71 = vector.extract_strided_slice %23 {offsets = [0, 24], sizes = [8, 8], strides = [1, 1]} : vector<16x32xf32> to vector<8x8xf32>
    %72 = vector.extract_strided_slice %24 {offsets = [0, 24], sizes = [8, 8], strides = [1, 1]} : vector<16x32xf32> to vector<8x8xf32>
    %73 = vector.extract_strided_slice %25 {offsets = [0, 24], sizes = [8, 8], strides = [1, 1]} : vector<16x32xf32> to vector<8x8xf32>
    %cst_29 = arith.constant dense<0.000000e+00> : vector<8x8xf32>
    %74 = tpu.matmul %71, %72, %cst_29 {dimension_numbers = #tpu.dot_dimension_numbers<[1], [1], [0], [0], [0, 0, 1, 0], [], []>} : vector<8x8xf32>, vector<8x8xf32>, vector<8x8xf32> -> vector<8x8xf32>
    %cst_30 = arith.constant dense<0xFF800000> : vector<8xf32>
    %75 = vector.multi_reduction <maximumf>, %74, %cst_30 [1] : vector<8x8xf32> to vector<8xf32>
    %76 = vector.shape_cast %75 : vector<8xf32> to vector<8x1xf32>
    %77 = vector.broadcast %76 : vector<8x1xf32> to vector<8x8xf32>
    %78 = arith.subf %74, %77 : vector<8x8xf32>
    %79 = math.exp %78 : vector<8x8xf32>
    %cst_31 = arith.constant dense<0.000000e+00> : vector<8xf32>
    %80 = vector.multi_reduction <add>, %79, %cst_31 [1] : vector<8x8xf32> to vector<8xf32>
    %81 = vector.shape_cast %80 : vector<8xf32> to vector<8x1xf32>
    %82 = tpu.reciprocal %81 : vector<8x1xf32> -> vector<8x1xf32>
    %83 = vector.broadcast %82 : vector<8x1xf32> to vector<8x8xf32>
    %84 = arith.mulf %79, %83 : vector<8x8xf32>
    %cst_32 = arith.constant dense<0.000000e+00> : vector<8x8xf32>
    %85 = tpu.matmul %84, %73, %cst_32 {dimension_numbers = #tpu.dot_dimension_numbers<[1], [0], [0], [1], [0, 0, 1, 1], [], []>} : vector<8x8xf32>, vector<8x8xf32>, vector<8x8xf32> -> vector<8x8xf32>
    %86 = tpu.concatenate %40, %55, %70, %85 in 1 : vector<8x8xf32>, vector<8x8xf32>, vector<8x8xf32>, vector<8x8xf32> -> vector<8x32xf32>
    %87 = vector.extract_strided_slice %23 {offsets = [8, 0], sizes = [8, 8], strides = [1, 1]} : vector<16x32xf32> to vector<8x8xf32>
    %88 = vector.extract_strided_slice %24 {offsets = [8, 0], sizes = [8, 8], strides = [1, 1]} : vector<16x32xf32> to vector<8x8xf32>
    %89 = vector.extract_strided_slice %25 {offsets = [8, 0], sizes = [8, 8], strides = [1, 1]} : vector<16x32xf32> to vector<8x8xf32>
    %cst_33 = arith.constant dense<0.000000e+00> : vector<8x8xf32>
    %90 = tpu.matmul %87, %88, %cst_33 {dimension_numbers = #tpu.dot_dimension_numbers<[1], [1], [0], [0], [0, 0, 1, 0], [], []>} : vector<8x8xf32>, vector<8x8xf32>, vector<8x8xf32> -> vector<8x8xf32>
    %cst_34 = arith.constant dense<0xFF800000> : vector<8xf32>
    %91 = vector.multi_reduction <maximumf>, %90, %cst_34 [1] : vector<8x8xf32> to vector<8xf32>
    %92 = vector.shape_cast %91 : vector<8xf32> to vector<8x1xf32>
    %93 = vector.broadcast %92 : vector<8x1xf32> to vector<8x8xf32>
    %94 = arith.subf %90, %93 : vector<8x8xf32>
    %95 = math.exp %94 : vector<8x8xf32>
    %cst_35 = arith.constant dense<0.000000e+00> : vector<8xf32>
    %96 = vector.multi_reduction <add>, %95, %cst_35 [1] : vector<8x8xf32> to vector<8xf32>
    %97 = vector.shape_cast %96 : vector<8xf32> to vector<8x1xf32>
    %98 = tpu.reciprocal %97 : vector<8x1xf32> -> vector<8x1xf32>
    %99 = vector.broadcast %98 : vector<8x1xf32> to vector<8x8xf32>
    %100 = arith.mulf %95, %99 : vector<8x8xf32>
    %cst_36 = arith.constant dense<0.000000e+00> : vector<8x8xf32>
    %101 = tpu.matmul %100, %89, %cst_36 {dimension_numbers = #tpu.dot_dimension_numbers<[1], [0], [0], [1], [0, 0, 1, 1], [], []>} : vector<8x8xf32>, vector<8x8xf32>, vector<8x8xf32> -> vector<8x8xf32>
    %102 = vector.extract_strided_slice %23 {offsets = [8, 8], sizes = [8, 8], strides = [1, 1]} : vector<16x32xf32> to vector<8x8xf32>
    %103 = vector.extract_strided_slice %24 {offsets = [8, 8], sizes = [8, 8], strides = [1, 1]} : vector<16x32xf32> to vector<8x8xf32>
    %104 = vector.extract_strided_slice %25 {offsets = [8, 8], sizes = [8, 8], strides = [1, 1]} : vector<16x32xf32> to vector<8x8xf32>
    %cst_37 = arith.constant dense<0.000000e+00> : vector<8x8xf32>
    %105 = tpu.matmul %102, %103, %cst_37 {dimension_numbers = #tpu.dot_dimension_numbers<[1], [1], [0], [0], [0, 0, 1, 0], [], []>} : vector<8x8xf32>, vector<8x8xf32>, vector<8x8xf32> -> vector<8x8xf32>
    %cst_38 = arith.constant dense<0xFF800000> : vector<8xf32>
    %106 = vector.multi_reduction <maximumf>, %105, %cst_38 [1] : vector<8x8xf32> to vector<8xf32>
    %107 = vector.shape_cast %106 : vector<8xf32> to vector<8x1xf32>
    %108 = vector.broadcast %107 : vector<8x1xf32> to vector<8x8xf32>
    %109 = arith.subf %105, %108 : vector<8x8xf32>
    %110 = math.exp %109 : vector<8x8xf32>
    %cst_39 = arith.constant dense<0.000000e+00> : vector<8xf32>
    %111 = vector.multi_reduction <add>, %110, %cst_39 [1] : vector<8x8xf32> to vector<8xf32>
    %112 = vector.shape_cast %111 : vector<8xf32> to vector<8x1xf32>
    %113 = tpu.reciprocal %112 : vector<8x1xf32> -> vector<8x1xf32>
    %114 = vector.broadcast %113 : vector<8x1xf32> to vector<8x8xf32>
    %115 = arith.mulf %110, %114 : vector<8x8xf32>
    %cst_40 = arith.constant dense<0.000000e+00> : vector<8x8xf32>
    %116 = tpu.matmul %115, %104, %cst_40 {dimension_numbers = #tpu.dot_dimension_numbers<[1], [0], [0], [1], [0, 0, 1, 1], [], []>} : vector<8x8xf32>, vector<8x8xf32>, vector<8x8xf32> -> vector<8x8xf32>
    %117 = vector.extract_strided_slice %23 {offsets = [8, 16], sizes = [8, 8], strides = [1, 1]} : vector<16x32xf32> to vector<8x8xf32>
    %118 = vector.extract_strided_slice %24 {offsets = [8, 16], sizes = [8, 8], strides = [1, 1]} : vector<16x32xf32> to vector<8x8xf32>
    %119 = vector.extract_strided_slice %25 {offsets = [8, 16], sizes = [8, 8], strides = [1, 1]} : vector<16x32xf32> to vector<8x8xf32>
    %cst_41 = arith.constant dense<0.000000e+00> : vector<8x8xf32>
    %120 = tpu.matmul %117, %118, %cst_41 {dimension_numbers = #tpu.dot_dimension_numbers<[1], [1], [0], [0], [0, 0, 1, 0], [], []>} : vector<8x8xf32>, vector<8x8xf32>, vector<8x8xf32> -> vector<8x8xf32>
    %cst_42 = arith.constant dense<0xFF800000> : vector<8xf32>
    %121 = vector.multi_reduction <maximumf>, %120, %cst_42 [1] : vector<8x8xf32> to vector<8xf32>
    %122 = vector.shape_cast %121 : vector<8xf32> to vector<8x1xf32>
    %123 = vector.broadcast %122 : vector<8x1xf32> to vector<8x8xf32>
    %124 = arith.subf %120, %123 : vector<8x8xf32>
    %125 = math.exp %124 : vector<8x8xf32>
    %cst_43 = arith.constant dense<0.000000e+00> : vector<8xf32>
    %126 = vector.multi_reduction <add>, %125, %cst_43 [1] : vector<8x8xf32> to vector<8xf32>
    %127 = vector.shape_cast %126 : vector<8xf32> to vector<8x1xf32>
    %128 = tpu.reciprocal %127 : vector<8x1xf32> -> vector<8x1xf32>
    %129 = vector.broadcast %128 : vector<8x1xf32> to vector<8x8xf32>
    %130 = arith.mulf %125, %129 : vector<8x8xf32>
    %cst_44 = arith.constant dense<0.000000e+00> : vector<8x8xf32>
    %131 = tpu.matmul %130, %119, %cst_44 {dimension_numbers = #tpu.dot_dimension_numbers<[1], [0], [0], [1], [0, 0, 1, 1], [], []>} : vector<8x8xf32>, vector<8x8xf32>, vector<8x8xf32> -> vector<8x8xf32>
    %132 = vector.extract_strided_slice %23 {offsets = [8, 24], sizes = [8, 8], strides = [1, 1]} : vector<16x32xf32> to vector<8x8xf32>
    %133 = vector.extract_strided_slice %24 {offsets = [8, 24], sizes = [8, 8], strides = [1, 1]} : vector<16x32xf32> to vector<8x8xf32>
    %134 = vector.extract_strided_slice %25 {offsets = [8, 24], sizes = [8, 8], strides = [1, 1]} : vector<16x32xf32> to vector<8x8xf32>
    %cst_45 = arith.constant dense<0.000000e+00> : vector<8x8xf32>
    %135 = tpu.matmul %132, %133, %cst_45 {dimension_numbers = #tpu.dot_dimension_numbers<[1], [1], [0], [0], [0, 0, 1, 0], [], []>} : vector<8x8xf32>, vector<8x8xf32>, vector<8x8xf32> -> vector<8x8xf32>
    %cst_46 = arith.constant dense<0xFF800000> : vector<8xf32>
    %136 = vector.multi_reduction <maximumf>, %135, %cst_46 [1] : vector<8x8xf32> to vector<8xf32>
    %137 = vector.shape_cast %136 : vector<8xf32> to vector<8x1xf32>
    %138 = vector.broadcast %137 : vector<8x1xf32> to vector<8x8xf32>
    %139 = arith.subf %135, %138 : vector<8x8xf32>
    %140 = math.exp %139 : vector<8x8xf32>
    %cst_47 = arith.constant dense<0.000000e+00> : vector<8xf32>
    %141 = vector.multi_reduction <add>, %140, %cst_47 [1] : vector<8x8xf32> to vector<8xf32>
    %142 = vector.shape_cast %141 : vector<8xf32> to vector<8x1xf32>
    %143 = tpu.reciprocal %142 : vector<8x1xf32> -> vector<8x1xf32>
    %144 = vector.broadcast %143 : vector<8x1xf32> to vector<8x8xf32>
    %145 = arith.mulf %140, %144 : vector<8x8xf32>
    %cst_48 = arith.constant dense<0.000000e+00> : vector<8x8xf32>
    %146 = tpu.matmul %145, %134, %cst_48 {dimension_numbers = #tpu.dot_dimension_numbers<[1], [0], [0], [1], [0, 0, 1, 1], [], []>} : vector<8x8xf32>, vector<8x8xf32>, vector<8x8xf32> -> vector<8x8xf32>
    %147 = tpu.concatenate %101, %116, %131, %146 in 1 : vector<8x8xf32>, vector<8x8xf32>, vector<8x8xf32>, vector<8x8xf32> -> vector<8x32xf32>
    %148 = tpu.concatenate %86, %147 in 0 : vector<8x32xf32>, vector<8x32xf32> -> vector<16x32xf32>
    %cst_49 = arith.constant dense<0.000000e+00> : vector<16x32xf32>
    %149 = tpu.matmul %148, %5, %cst_49 {dimension_numbers = #tpu.dot_dimension_numbers<[1], [0], [0], [1], [0, 0, 1, 1], [], []>} : vector<16x32xf32>, vector<32x32xf32>, vector<16x32xf32> -> vector<16x32xf32>
    %150 = vector.broadcast %13 : vector<1x32xf32> to vector<16x32xf32>
    %151 = arith.addf %149, %150 : vector<16x32xf32>
    %152 = arith.addf %0, %151 : vector<16x32xf32>
    %cst_50 = arith.constant dense<0.000000e+00> : vector<16xf32>
    %153 = vector.multi_reduction <add>, %152, %cst_50 [1] : vector<16x32xf32> to vector<16xf32>
    %154 = vector.shape_cast %153 : vector<16xf32> to vector<16x1xf32>
    %cst_51 = arith.constant 3.200000e+01 : f32
    %155 = vector.broadcast %cst_51 : f32 to vector<16x1xf32>
    %156 = arith.divf %154, %155 : vector<16x1xf32>
    %157 = arith.mulf %152, %152 : vector<16x32xf32>
    %cst_52 = arith.constant dense<0.000000e+00> : vector<16xf32>
    %158 = vector.multi_reduction <add>, %157, %cst_52 [1] : vector<16x32xf32> to vector<16xf32>
    %159 = vector.shape_cast %158 : vector<16xf32> to vector<16x1xf32>
    %cst_53 = arith.constant 3.200000e+01 : f32
    %160 = vector.broadcast %cst_53 : f32 to vector<16x1xf32>
    %161 = arith.divf %159, %160 : vector<16x1xf32>
    %162 = arith.mulf %156, %156 : vector<16x1xf32>
    %163 = arith.subf %161, %162 : vector<16x1xf32>
    %164 = vector.broadcast %156 : vector<16x1xf32> to vector<16x32xf32>
    %165 = arith.subf %152, %164 : vector<16x32xf32>
    %cst_54 = arith.constant 9.99999974E-6 : f32
    %166 = vector.broadcast %cst_54 : f32 to vector<16x1xf32>
    %167 = arith.addf %163, %166 : vector<16x1xf32>
    %168 = math.rsqrt %167 : vector<16x1xf32>
    %169 = vector.broadcast %168 : vector<16x1xf32> to vector<16x32xf32>
    %170 = arith.mulf %165, %169 : vector<16x32xf32>
    %171 = vector.broadcast %16 : vector<1x32xf32> to vector<16x32xf32>
    %172 = arith.mulf %170, %171 : vector<16x32xf32>
    %173 = vector.broadcast %17 : vector<1x32xf32> to vector<16x32xf32>
    %174 = arith.addf %172, %173 : vector<16x32xf32>
    %cst_55 = arith.constant dense<0.000000e+00> : vector<16x128xf32>
    %175 = tpu.matmul %174, %7, %cst_55 {dimension_numbers = #tpu.dot_dimension_numbers<[1], [0], [0], [1], [0, 0, 1, 1], [], []>} : vector<16x32xf32>, vector<32x128xf32>, vector<16x128xf32> -> vector<16x128xf32>
    %176 = vector.broadcast %14 : vector<1x128xf32> to vector<16x128xf32>
    %177 = arith.addf %175, %176 : vector<16x128xf32>
    %cst_56 = arith.constant 0.000000e+00 : f32
    %178 = vector.broadcast %cst_56 : f32 to vector<16x128xf32>
    %179 = arith.maximumf %177, %178 : vector<16x128xf32>
    %cst_57 = arith.constant dense<0.000000e+00> : vector<16x32xf32>
    %180 = tpu.matmul %179, %9, %cst_57 {dimension_numbers = #tpu.dot_dimension_numbers<[1], [1], [0], [0], [0, 0, 1, 0], [], []>} : vector<16x128xf32>, vector<32x128xf32>, vector<16x32xf32> -> vector<16x32xf32>
    %181 = vector.broadcast %15 : vector<1x32xf32> to vector<16x32xf32>
    %182 = arith.addf %180, %181 : vector<16x32xf32>
    %183 = arith.addf %174, %182 : vector<16x32xf32>
    %cst_58 = arith.constant dense<0.000000e+00> : vector<16xf32>
    %184 = vector.multi_reduction <add>, %183, %cst_58 [1] : vector<16x32xf32> to vector<16xf32>
    %185 = vector.shape_cast %184 : vector<16xf32> to vector<16x1xf32>
    %cst_59 = arith.constant 3.200000e+01 : f32
    %186 = vector.broadcast %cst_59 : f32 to vector<16x1xf32>
    %187 = arith.divf %185, %186 : vector<16x1xf32>
    %188 = arith.mulf %183, %183 : vector<16x32xf32>
    %cst_60 = arith.constant dense<0.000000e+00> : vector<16xf32>
    %189 = vector.multi_reduction <add>, %188, %cst_60 [1] : vector<16x32xf32> to vector<16xf32>
    %190 = vector.shape_cast %189 : vector<16xf32> to vector<16x1xf32>
    %cst_61 = arith.constant 3.200000e+01 : f32
    %191 = vector.broadcast %cst_61 : f32 to vector<16x1xf32>
    %192 = arith.divf %190, %191 : vector<16x1xf32>
    %193 = arith.mulf %187, %187 : vector<16x1xf32>
    %194 = arith.subf %192, %193 : vector<16x1xf32>
    %195 = vector.broadcast %187 : vector<16x1xf32> to vector<16x32xf32>
    %196 = arith.subf %183, %195 : vector<16x32xf32>
    %cst_62 = arith.constant 9.99999974E-6 : f32
    %197 = vector.broadcast %cst_62 : f32 to vector<16x1xf32>
    %198 = arith.addf %194, %197 : vector<16x1xf32>
    %199 = math.rsqrt %198 : vector<16x1xf32>
    %200 = vector.broadcast %199 : vector<16x1xf32> to vector<16x32xf32>
    %201 = arith.mulf %196, %200 : vector<16x32xf32>
    %202 = vector.broadcast %18 : vector<1x32xf32> to vector<16x32xf32>
    %203 = arith.mulf %201, %202 : vector<16x32xf32>
    %204 = vector.broadcast %19 : vector<1x32xf32> to vector<16x32xf32>
    %205 = arith.addf %203, %204 : vector<16x32xf32>
    %c1_63 = arith.constant 1 : index
    %c0_64 = arith.constant 0 : index
    %c0_65 = arith.constant 0 : index
    %c0_66 = arith.constant 0 : index
    %206 = vector.load %arg2[%c1_63, %c0_64, %c0_65, %c0_66] : memref<2x4x32x128xf32, #tpu.memory_space<vmem>>, vector<1x1x32x128xf32>
    %207 = vector.shape_cast %206 : vector<1x1x32x128xf32> to vector<32x128xf32>
    %c1_67 = arith.constant 1 : index
    %c1_68 = arith.constant 1 : index
    %c0_69 = arith.constant 0 : index
    %c0_70 = arith.constant 0 : index
    %208 = vector.load %arg2[%c1_67, %c1_68, %c0_69, %c0_70] : memref<2x4x32x128xf32, #tpu.memory_space<vmem>>, vector<1x1x32x128xf32>
    %209 = vector.shape_cast %208 : vector<1x1x32x128xf32> to vector<32x128xf32>
    %210 = vector.extract_strided_slice %209 {offsets = [0, 0], sizes = [32, 32], strides = [1, 1]} : vector<32x128xf32> to vector<32x32xf32>
    %c1_71 = arith.constant 1 : index
    %c2_72 = arith.constant 2 : index
    %c0_73 = arith.constant 0 : index
    %c0_74 = arith.constant 0 : index
    %211 = vector.load %arg2[%c1_71, %c2_72, %c0_73, %c0_74] : memref<2x4x32x128xf32, #tpu.memory_space<vmem>>, vector<1x1x32x128xf32>
    %212 = vector.shape_cast %211 : vector<1x1x32x128xf32> to vector<32x128xf32>
    %c1_75 = arith.constant 1 : index
    %c3_76 = arith.constant 3 : index
    %c0_77 = arith.constant 0 : index
    %c0_78 = arith.constant 0 : index
    %213 = vector.load %arg2[%c1_75, %c3_76, %c0_77, %c0_78] : memref<2x4x32x128xf32, #tpu.memory_space<vmem>>, vector<1x1x32x128xf32>
    %214 = vector.shape_cast %213 : vector<1x1x32x128xf32> to vector<32x128xf32>
    %c1_79 = arith.constant 1 : index
    %c0_80 = arith.constant 0 : index
    %c0_81 = arith.constant 0 : index
    %215 = vector.load %arg3[%c1_79, %c0_80, %c0_81] : memref<3x8x128xf32, #tpu.memory_space<vmem>>, vector<1x8x128xf32>
    %216 = vector.shape_cast %215 : vector<1x8x128xf32> to vector<8x128xf32>
    %217 = vector.extract_strided_slice %216 {offsets = [0, 0], sizes = [1, 128], strides = [1, 1]} : vector<8x128xf32> to vector<1x128xf32>
    %218 = vector.extract_strided_slice %216 {offsets = [1, 0], sizes = [1, 32], strides = [1, 1]} : vector<8x128xf32> to vector<1x32xf32>
    %219 = vector.extract_strided_slice %216 {offsets = [2, 0], sizes = [1, 128], strides = [1, 1]} : vector<8x128xf32> to vector<1x128xf32>
    %220 = vector.extract_strided_slice %216 {offsets = [3, 0], sizes = [1, 32], strides = [1, 1]} : vector<8x128xf32> to vector<1x32xf32>
    %221 = vector.extract_strided_slice %216 {offsets = [4, 0], sizes = [1, 32], strides = [1, 1]} : vector<8x128xf32> to vector<1x32xf32>
    %222 = vector.extract_strided_slice %216 {offsets = [5, 0], sizes = [1, 32], strides = [1, 1]} : vector<8x128xf32> to vector<1x32xf32>
    %223 = vector.extract_strided_slice %216 {offsets = [6, 0], sizes = [1, 32], strides = [1, 1]} : vector<8x128xf32> to vector<1x32xf32>
    %224 = vector.extract_strided_slice %216 {offsets = [7, 0], sizes = [1, 32], strides = [1, 1]} : vector<8x128xf32> to vector<1x32xf32>
    %cst_82 = arith.constant dense<0.000000e+00> : vector<16x128xf32>
    %225 = tpu.matmul %205, %207, %cst_82 {dimension_numbers = #tpu.dot_dimension_numbers<[1], [0], [0], [1], [0, 0, 1, 1], [], []>} : vector<16x32xf32>, vector<32x128xf32>, vector<16x128xf32> -> vector<16x128xf32>
    %226 = vector.broadcast %217 : vector<1x128xf32> to vector<16x128xf32>
    %227 = arith.addf %225, %226 : vector<16x128xf32>
    %228 = vector.extract_strided_slice %227 {offsets = [0, 0], sizes = [16, 32], strides = [1, 1]} : vector<16x128xf32> to vector<16x32xf32>
    %229 = vector.extract_strided_slice %227 {offsets = [0, 32], sizes = [16, 32], strides = [1, 1]} : vector<16x128xf32> to vector<16x32xf32>
    %230 = vector.extract_strided_slice %227 {offsets = [0, 64], sizes = [16, 32], strides = [1, 1]} : vector<16x128xf32> to vector<16x32xf32>
    %231 = vector.extract_strided_slice %228 {offsets = [0, 0], sizes = [8, 8], strides = [1, 1]} : vector<16x32xf32> to vector<8x8xf32>
    %232 = vector.extract_strided_slice %229 {offsets = [0, 0], sizes = [8, 8], strides = [1, 1]} : vector<16x32xf32> to vector<8x8xf32>
    %233 = vector.extract_strided_slice %230 {offsets = [0, 0], sizes = [8, 8], strides = [1, 1]} : vector<16x32xf32> to vector<8x8xf32>
    %cst_83 = arith.constant dense<0.000000e+00> : vector<8x8xf32>
    %234 = tpu.matmul %231, %232, %cst_83 {dimension_numbers = #tpu.dot_dimension_numbers<[1], [1], [0], [0], [0, 0, 1, 0], [], []>} : vector<8x8xf32>, vector<8x8xf32>, vector<8x8xf32> -> vector<8x8xf32>
    %cst_84 = arith.constant dense<0xFF800000> : vector<8xf32>
    %235 = vector.multi_reduction <maximumf>, %234, %cst_84 [1] : vector<8x8xf32> to vector<8xf32>
    %236 = vector.shape_cast %235 : vector<8xf32> to vector<8x1xf32>
    %237 = vector.broadcast %236 : vector<8x1xf32> to vector<8x8xf32>
    %238 = arith.subf %234, %237 : vector<8x8xf32>
    %239 = math.exp %238 : vector<8x8xf32>
    %cst_85 = arith.constant dense<0.000000e+00> : vector<8xf32>
    %240 = vector.multi_reduction <add>, %239, %cst_85 [1] : vector<8x8xf32> to vector<8xf32>
    %241 = vector.shape_cast %240 : vector<8xf32> to vector<8x1xf32>
    %242 = tpu.reciprocal %241 : vector<8x1xf32> -> vector<8x1xf32>
    %243 = vector.broadcast %242 : vector<8x1xf32> to vector<8x8xf32>
    %244 = arith.mulf %239, %243 : vector<8x8xf32>
    %cst_86 = arith.constant dense<0.000000e+00> : vector<8x8xf32>
    %245 = tpu.matmul %244, %233, %cst_86 {dimension_numbers = #tpu.dot_dimension_numbers<[1], [0], [0], [1], [0, 0, 1, 1], [], []>} : vector<8x8xf32>, vector<8x8xf32>, vector<8x8xf32> -> vector<8x8xf32>
    %246 = vector.extract_strided_slice %228 {offsets = [0, 8], sizes = [8, 8], strides = [1, 1]} : vector<16x32xf32> to vector<8x8xf32>
    %247 = vector.extract_strided_slice %229 {offsets = [0, 8], sizes = [8, 8], strides = [1, 1]} : vector<16x32xf32> to vector<8x8xf32>
    %248 = vector.extract_strided_slice %230 {offsets = [0, 8], sizes = [8, 8], strides = [1, 1]} : vector<16x32xf32> to vector<8x8xf32>
    %cst_87 = arith.constant dense<0.000000e+00> : vector<8x8xf32>
    %249 = tpu.matmul %246, %247, %cst_87 {dimension_numbers = #tpu.dot_dimension_numbers<[1], [1], [0], [0], [0, 0, 1, 0], [], []>} : vector<8x8xf32>, vector<8x8xf32>, vector<8x8xf32> -> vector<8x8xf32>
    %cst_88 = arith.constant dense<0xFF800000> : vector<8xf32>
    %250 = vector.multi_reduction <maximumf>, %249, %cst_88 [1] : vector<8x8xf32> to vector<8xf32>
    %251 = vector.shape_cast %250 : vector<8xf32> to vector<8x1xf32>
    %252 = vector.broadcast %251 : vector<8x1xf32> to vector<8x8xf32>
    %253 = arith.subf %249, %252 : vector<8x8xf32>
    %254 = math.exp %253 : vector<8x8xf32>
    %cst_89 = arith.constant dense<0.000000e+00> : vector<8xf32>
    %255 = vector.multi_reduction <add>, %254, %cst_89 [1] : vector<8x8xf32> to vector<8xf32>
    %256 = vector.shape_cast %255 : vector<8xf32> to vector<8x1xf32>
    %257 = tpu.reciprocal %256 : vector<8x1xf32> -> vector<8x1xf32>
    %258 = vector.broadcast %257 : vector<8x1xf32> to vector<8x8xf32>
    %259 = arith.mulf %254, %258 : vector<8x8xf32>
    %cst_90 = arith.constant dense<0.000000e+00> : vector<8x8xf32>
    %260 = tpu.matmul %259, %248, %cst_90 {dimension_numbers = #tpu.dot_dimension_numbers<[1], [0], [0], [1], [0, 0, 1, 1], [], []>} : vector<8x8xf32>, vector<8x8xf32>, vector<8x8xf32> -> vector<8x8xf32>
    %261 = vector.extract_strided_slice %228 {offsets = [0, 16], sizes = [8, 8], strides = [1, 1]} : vector<16x32xf32> to vector<8x8xf32>
    %262 = vector.extract_strided_slice %229 {offsets = [0, 16], sizes = [8, 8], strides = [1, 1]} : vector<16x32xf32> to vector<8x8xf32>
    %263 = vector.extract_strided_slice %230 {offsets = [0, 16], sizes = [8, 8], strides = [1, 1]} : vector<16x32xf32> to vector<8x8xf32>
    %cst_91 = arith.constant dense<0.000000e+00> : vector<8x8xf32>
    %264 = tpu.matmul %261, %262, %cst_91 {dimension_numbers = #tpu.dot_dimension_numbers<[1], [1], [0], [0], [0, 0, 1, 0], [], []>} : vector<8x8xf32>, vector<8x8xf32>, vector<8x8xf32> -> vector<8x8xf32>
    %cst_92 = arith.constant dense<0xFF800000> : vector<8xf32>
    %265 = vector.multi_reduction <maximumf>, %264, %cst_92 [1] : vector<8x8xf32> to vector<8xf32>
    %266 = vector.shape_cast %265 : vector<8xf32> to vector<8x1xf32>
    %267 = vector.broadcast %266 : vector<8x1xf32> to vector<8x8xf32>
    %268 = arith.subf %264, %267 : vector<8x8xf32>
    %269 = math.exp %268 : vector<8x8xf32>
    %cst_93 = arith.constant dense<0.000000e+00> : vector<8xf32>
    %270 = vector.multi_reduction <add>, %269, %cst_93 [1] : vector<8x8xf32> to vector<8xf32>
    %271 = vector.shape_cast %270 : vector<8xf32> to vector<8x1xf32>
    %272 = tpu.reciprocal %271 : vector<8x1xf32> -> vector<8x1xf32>
    %273 = vector.broadcast %272 : vector<8x1xf32> to vector<8x8xf32>
    %274 = arith.mulf %269, %273 : vector<8x8xf32>
    %cst_94 = arith.constant dense<0.000000e+00> : vector<8x8xf32>
    %275 = tpu.matmul %274, %263, %cst_94 {dimension_numbers = #tpu.dot_dimension_numbers<[1], [0], [0], [1], [0, 0, 1, 1], [], []>} : vector<8x8xf32>, vector<8x8xf32>, vector<8x8xf32> -> vector<8x8xf32>
    %276 = vector.extract_strided_slice %228 {offsets = [0, 24], sizes = [8, 8], strides = [1, 1]} : vector<16x32xf32> to vector<8x8xf32>
    %277 = vector.extract_strided_slice %229 {offsets = [0, 24], sizes = [8, 8], strides = [1, 1]} : vector<16x32xf32> to vector<8x8xf32>
    %278 = vector.extract_strided_slice %230 {offsets = [0, 24], sizes = [8, 8], strides = [1, 1]} : vector<16x32xf32> to vector<8x8xf32>
    %cst_95 = arith.constant dense<0.000000e+00> : vector<8x8xf32>
    %279 = tpu.matmul %276, %277, %cst_95 {dimension_numbers = #tpu.dot_dimension_numbers<[1], [1], [0], [0], [0, 0, 1, 0], [], []>} : vector<8x8xf32>, vector<8x8xf32>, vector<8x8xf32> -> vector<8x8xf32>
    %cst_96 = arith.constant dense<0xFF800000> : vector<8xf32>
    %280 = vector.multi_reduction <maximumf>, %279, %cst_96 [1] : vector<8x8xf32> to vector<8xf32>
    %281 = vector.shape_cast %280 : vector<8xf32> to vector<8x1xf32>
    %282 = vector.broadcast %281 : vector<8x1xf32> to vector<8x8xf32>
    %283 = arith.subf %279, %282 : vector<8x8xf32>
    %284 = math.exp %283 : vector<8x8xf32>
    %cst_97 = arith.constant dense<0.000000e+00> : vector<8xf32>
    %285 = vector.multi_reduction <add>, %284, %cst_97 [1] : vector<8x8xf32> to vector<8xf32>
    %286 = vector.shape_cast %285 : vector<8xf32> to vector<8x1xf32>
    %287 = tpu.reciprocal %286 : vector<8x1xf32> -> vector<8x1xf32>
    %288 = vector.broadcast %287 : vector<8x1xf32> to vector<8x8xf32>
    %289 = arith.mulf %284, %288 : vector<8x8xf32>
    %cst_98 = arith.constant dense<0.000000e+00> : vector<8x8xf32>
    %290 = tpu.matmul %289, %278, %cst_98 {dimension_numbers = #tpu.dot_dimension_numbers<[1], [0], [0], [1], [0, 0, 1, 1], [], []>} : vector<8x8xf32>, vector<8x8xf32>, vector<8x8xf32> -> vector<8x8xf32>
    %291 = tpu.concatenate %245, %260, %275, %290 in 1 : vector<8x8xf32>, vector<8x8xf32>, vector<8x8xf32>, vector<8x8xf32> -> vector<8x32xf32>
    %292 = vector.extract_strided_slice %228 {offsets = [8, 0], sizes = [8, 8], strides = [1, 1]} : vector<16x32xf32> to vector<8x8xf32>
    %293 = vector.extract_strided_slice %229 {offsets = [8, 0], sizes = [8, 8], strides = [1, 1]} : vector<16x32xf32> to vector<8x8xf32>
    %294 = vector.extract_strided_slice %230 {offsets = [8, 0], sizes = [8, 8], strides = [1, 1]} : vector<16x32xf32> to vector<8x8xf32>
    %cst_99 = arith.constant dense<0.000000e+00> : vector<8x8xf32>
    %295 = tpu.matmul %292, %293, %cst_99 {dimension_numbers = #tpu.dot_dimension_numbers<[1], [1], [0], [0], [0, 0, 1, 0], [], []>} : vector<8x8xf32>, vector<8x8xf32>, vector<8x8xf32> -> vector<8x8xf32>
    %cst_100 = arith.constant dense<0xFF800000> : vector<8xf32>
    %296 = vector.multi_reduction <maximumf>, %295, %cst_100 [1] : vector<8x8xf32> to vector<8xf32>
    %297 = vector.shape_cast %296 : vector<8xf32> to vector<8x1xf32>
    %298 = vector.broadcast %297 : vector<8x1xf32> to vector<8x8xf32>
    %299 = arith.subf %295, %298 : vector<8x8xf32>
    %300 = math.exp %299 : vector<8x8xf32>
    %cst_101 = arith.constant dense<0.000000e+00> : vector<8xf32>
    %301 = vector.multi_reduction <add>, %300, %cst_101 [1] : vector<8x8xf32> to vector<8xf32>
    %302 = vector.shape_cast %301 : vector<8xf32> to vector<8x1xf32>
    %303 = tpu.reciprocal %302 : vector<8x1xf32> -> vector<8x1xf32>
    %304 = vector.broadcast %303 : vector<8x1xf32> to vector<8x8xf32>
    %305 = arith.mulf %300, %304 : vector<8x8xf32>
    %cst_102 = arith.constant dense<0.000000e+00> : vector<8x8xf32>
    %306 = tpu.matmul %305, %294, %cst_102 {dimension_numbers = #tpu.dot_dimension_numbers<[1], [0], [0], [1], [0, 0, 1, 1], [], []>} : vector<8x8xf32>, vector<8x8xf32>, vector<8x8xf32> -> vector<8x8xf32>
    %307 = vector.extract_strided_slice %228 {offsets = [8, 8], sizes = [8, 8], strides = [1, 1]} : vector<16x32xf32> to vector<8x8xf32>
    %308 = vector.extract_strided_slice %229 {offsets = [8, 8], sizes = [8, 8], strides = [1, 1]} : vector<16x32xf32> to vector<8x8xf32>
    %309 = vector.extract_strided_slice %230 {offsets = [8, 8], sizes = [8, 8], strides = [1, 1]} : vector<16x32xf32> to vector<8x8xf32>
    %cst_103 = arith.constant dense<0.000000e+00> : vector<8x8xf32>
    %310 = tpu.matmul %307, %308, %cst_103 {dimension_numbers = #tpu.dot_dimension_numbers<[1], [1], [0], [0], [0, 0, 1, 0], [], []>} : vector<8x8xf32>, vector<8x8xf32>, vector<8x8xf32> -> vector<8x8xf32>
    %cst_104 = arith.constant dense<0xFF800000> : vector<8xf32>
    %311 = vector.multi_reduction <maximumf>, %310, %cst_104 [1] : vector<8x8xf32> to vector<8xf32>
    %312 = vector.shape_cast %311 : vector<8xf32> to vector<8x1xf32>
    %313 = vector.broadcast %312 : vector<8x1xf32> to vector<8x8xf32>
    %314 = arith.subf %310, %313 : vector<8x8xf32>
    %315 = math.exp %314 : vector<8x8xf32>
    %cst_105 = arith.constant dense<0.000000e+00> : vector<8xf32>
    %316 = vector.multi_reduction <add>, %315, %cst_105 [1] : vector<8x8xf32> to vector<8xf32>
    %317 = vector.shape_cast %316 : vector<8xf32> to vector<8x1xf32>
    %318 = tpu.reciprocal %317 : vector<8x1xf32> -> vector<8x1xf32>
    %319 = vector.broadcast %318 : vector<8x1xf32> to vector<8x8xf32>
    %320 = arith.mulf %315, %319 : vector<8x8xf32>
    %cst_106 = arith.constant dense<0.000000e+00> : vector<8x8xf32>
    %321 = tpu.matmul %320, %309, %cst_106 {dimension_numbers = #tpu.dot_dimension_numbers<[1], [0], [0], [1], [0, 0, 1, 1], [], []>} : vector<8x8xf32>, vector<8x8xf32>, vector<8x8xf32> -> vector<8x8xf32>
    %322 = vector.extract_strided_slice %228 {offsets = [8, 16], sizes = [8, 8], strides = [1, 1]} : vector<16x32xf32> to vector<8x8xf32>
    %323 = vector.extract_strided_slice %229 {offsets = [8, 16], sizes = [8, 8], strides = [1, 1]} : vector<16x32xf32> to vector<8x8xf32>
    %324 = vector.extract_strided_slice %230 {offsets = [8, 16], sizes = [8, 8], strides = [1, 1]} : vector<16x32xf32> to vector<8x8xf32>
    %cst_107 = arith.constant dense<0.000000e+00> : vector<8x8xf32>
    %325 = tpu.matmul %322, %323, %cst_107 {dimension_numbers = #tpu.dot_dimension_numbers<[1], [1], [0], [0], [0, 0, 1, 0], [], []>} : vector<8x8xf32>, vector<8x8xf32>, vector<8x8xf32> -> vector<8x8xf32>
    %cst_108 = arith.constant dense<0xFF800000> : vector<8xf32>
    %326 = vector.multi_reduction <maximumf>, %325, %cst_108 [1] : vector<8x8xf32> to vector<8xf32>
    %327 = vector.shape_cast %326 : vector<8xf32> to vector<8x1xf32>
    %328 = vector.broadcast %327 : vector<8x1xf32> to vector<8x8xf32>
    %329 = arith.subf %325, %328 : vector<8x8xf32>
    %330 = math.exp %329 : vector<8x8xf32>
    %cst_109 = arith.constant dense<0.000000e+00> : vector<8xf32>
    %331 = vector.multi_reduction <add>, %330, %cst_109 [1] : vector<8x8xf32> to vector<8xf32>
    %332 = vector.shape_cast %331 : vector<8xf32> to vector<8x1xf32>
    %333 = tpu.reciprocal %332 : vector<8x1xf32> -> vector<8x1xf32>
    %334 = vector.broadcast %333 : vector<8x1xf32> to vector<8x8xf32>
    %335 = arith.mulf %330, %334 : vector<8x8xf32>
    %cst_110 = arith.constant dense<0.000000e+00> : vector<8x8xf32>
    %336 = tpu.matmul %335, %324, %cst_110 {dimension_numbers = #tpu.dot_dimension_numbers<[1], [0], [0], [1], [0, 0, 1, 1], [], []>} : vector<8x8xf32>, vector<8x8xf32>, vector<8x8xf32> -> vector<8x8xf32>
    %337 = vector.extract_strided_slice %228 {offsets = [8, 24], sizes = [8, 8], strides = [1, 1]} : vector<16x32xf32> to vector<8x8xf32>
    %338 = vector.extract_strided_slice %229 {offsets = [8, 24], sizes = [8, 8], strides = [1, 1]} : vector<16x32xf32> to vector<8x8xf32>
    %339 = vector.extract_strided_slice %230 {offsets = [8, 24], sizes = [8, 8], strides = [1, 1]} : vector<16x32xf32> to vector<8x8xf32>
    %cst_111 = arith.constant dense<0.000000e+00> : vector<8x8xf32>
    %340 = tpu.matmul %337, %338, %cst_111 {dimension_numbers = #tpu.dot_dimension_numbers<[1], [1], [0], [0], [0, 0, 1, 0], [], []>} : vector<8x8xf32>, vector<8x8xf32>, vector<8x8xf32> -> vector<8x8xf32>
    %cst_112 = arith.constant dense<0xFF800000> : vector<8xf32>
    %341 = vector.multi_reduction <maximumf>, %340, %cst_112 [1] : vector<8x8xf32> to vector<8xf32>
    %342 = vector.shape_cast %341 : vector<8xf32> to vector<8x1xf32>
    %343 = vector.broadcast %342 : vector<8x1xf32> to vector<8x8xf32>
    %344 = arith.subf %340, %343 : vector<8x8xf32>
    %345 = math.exp %344 : vector<8x8xf32>
    %cst_113 = arith.constant dense<0.000000e+00> : vector<8xf32>
    %346 = vector.multi_reduction <add>, %345, %cst_113 [1] : vector<8x8xf32> to vector<8xf32>
    %347 = vector.shape_cast %346 : vector<8xf32> to vector<8x1xf32>
    %348 = tpu.reciprocal %347 : vector<8x1xf32> -> vector<8x1xf32>
    %349 = vector.broadcast %348 : vector<8x1xf32> to vector<8x8xf32>
    %350 = arith.mulf %345, %349 : vector<8x8xf32>
    %cst_114 = arith.constant dense<0.000000e+00> : vector<8x8xf32>
    %351 = tpu.matmul %350, %339, %cst_114 {dimension_numbers = #tpu.dot_dimension_numbers<[1], [0], [0], [1], [0, 0, 1, 1], [], []>} : vector<8x8xf32>, vector<8x8xf32>, vector<8x8xf32> -> vector<8x8xf32>
    %352 = tpu.concatenate %306, %321, %336, %351 in 1 : vector<8x8xf32>, vector<8x8xf32>, vector<8x8xf32>, vector<8x8xf32> -> vector<8x32xf32>
    %353 = tpu.concatenate %291, %352 in 0 : vector<8x32xf32>, vector<8x32xf32> -> vector<16x32xf32>
    %cst_115 = arith.constant dense<0.000000e+00> : vector<16x32xf32>
    %354 = tpu.matmul %353, %210, %cst_115 {dimension_numbers = #tpu.dot_dimension_numbers<[1], [0], [0], [1], [0, 0, 1, 1], [], []>} : vector<16x32xf32>, vector<32x32xf32>, vector<16x32xf32> -> vector<16x32xf32>
    %355 = vector.broadcast %218 : vector<1x32xf32> to vector<16x32xf32>
    %356 = arith.addf %354, %355 : vector<16x32xf32>
    %357 = arith.addf %205, %356 : vector<16x32xf32>
    %cst_116 = arith.constant dense<0.000000e+00> : vector<16xf32>
    %358 = vector.multi_reduction <add>, %357, %cst_116 [1] : vector<16x32xf32> to vector<16xf32>
    %359 = vector.shape_cast %358 : vector<16xf32> to vector<16x1xf32>
    %cst_117 = arith.constant 3.200000e+01 : f32
    %360 = vector.broadcast %cst_117 : f32 to vector<16x1xf32>
    %361 = arith.divf %359, %360 : vector<16x1xf32>
    %362 = arith.mulf %357, %357 : vector<16x32xf32>
    %cst_118 = arith.constant dense<0.000000e+00> : vector<16xf32>
    %363 = vector.multi_reduction <add>, %362, %cst_118 [1] : vector<16x32xf32> to vector<16xf32>
    %364 = vector.shape_cast %363 : vector<16xf32> to vector<16x1xf32>
    %cst_119 = arith.constant 3.200000e+01 : f32
    %365 = vector.broadcast %cst_119 : f32 to vector<16x1xf32>
    %366 = arith.divf %364, %365 : vector<16x1xf32>
    %367 = arith.mulf %361, %361 : vector<16x1xf32>
    %368 = arith.subf %366, %367 : vector<16x1xf32>
    %369 = vector.broadcast %361 : vector<16x1xf32> to vector<16x32xf32>
    %370 = arith.subf %357, %369 : vector<16x32xf32>
    %cst_120 = arith.constant 9.99999974E-6 : f32
    %371 = vector.broadcast %cst_120 : f32 to vector<16x1xf32>
    %372 = arith.addf %368, %371 : vector<16x1xf32>
    %373 = math.rsqrt %372 : vector<16x1xf32>
    %374 = vector.broadcast %373 : vector<16x1xf32> to vector<16x32xf32>
    %375 = arith.mulf %370, %374 : vector<16x32xf32>
    %376 = vector.broadcast %221 : vector<1x32xf32> to vector<16x32xf32>
    %377 = arith.mulf %375, %376 : vector<16x32xf32>
    %378 = vector.broadcast %222 : vector<1x32xf32> to vector<16x32xf32>
    %379 = arith.addf %377, %378 : vector<16x32xf32>
    %cst_121 = arith.constant dense<0.000000e+00> : vector<16x128xf32>
    %380 = tpu.matmul %379, %212, %cst_121 {dimension_numbers = #tpu.dot_dimension_numbers<[1], [0], [0], [1], [0, 0, 1, 1], [], []>} : vector<16x32xf32>, vector<32x128xf32>, vector<16x128xf32> -> vector<16x128xf32>
    %381 = vector.broadcast %219 : vector<1x128xf32> to vector<16x128xf32>
    %382 = arith.addf %380, %381 : vector<16x128xf32>
    %cst_122 = arith.constant 0.000000e+00 : f32
    %383 = vector.broadcast %cst_122 : f32 to vector<16x128xf32>
    %384 = arith.maximumf %382, %383 : vector<16x128xf32>
    %cst_123 = arith.constant dense<0.000000e+00> : vector<16x32xf32>
    %385 = tpu.matmul %384, %214, %cst_123 {dimension_numbers = #tpu.dot_dimension_numbers<[1], [1], [0], [0], [0, 0, 1, 0], [], []>} : vector<16x128xf32>, vector<32x128xf32>, vector<16x32xf32> -> vector<16x32xf32>
    %386 = vector.broadcast %220 : vector<1x32xf32> to vector<16x32xf32>
    %387 = arith.addf %385, %386 : vector<16x32xf32>
    %388 = arith.addf %379, %387 : vector<16x32xf32>
    %cst_124 = arith.constant dense<0.000000e+00> : vector<16xf32>
    %389 = vector.multi_reduction <add>, %388, %cst_124 [1] : vector<16x32xf32> to vector<16xf32>
    %390 = vector.shape_cast %389 : vector<16xf32> to vector<16x1xf32>
    %cst_125 = arith.constant 3.200000e+01 : f32
    %391 = vector.broadcast %cst_125 : f32 to vector<16x1xf32>
    %392 = arith.divf %390, %391 : vector<16x1xf32>
    %393 = arith.mulf %388, %388 : vector<16x32xf32>
    %cst_126 = arith.constant dense<0.000000e+00> : vector<16xf32>
    %394 = vector.multi_reduction <add>, %393, %cst_126 [1] : vector<16x32xf32> to vector<16xf32>
    %395 = vector.shape_cast %394 : vector<16xf32> to vector<16x1xf32>
    %cst_127 = arith.constant 3.200000e+01 : f32
    %396 = vector.broadcast %cst_127 : f32 to vector<16x1xf32>
    %397 = arith.divf %395, %396 : vector<16x1xf32>
    %398 = arith.mulf %392, %392 : vector<16x1xf32>
    %399 = arith.subf %397, %398 : vector<16x1xf32>
    %400 = vector.broadcast %392 : vector<16x1xf32> to vector<16x32xf32>
    %401 = arith.subf %388, %400 : vector<16x32xf32>
    %cst_128 = arith.constant 9.99999974E-6 : f32
    %402 = vector.broadcast %cst_128 : f32 to vector<16x1xf32>
    %403 = arith.addf %399, %402 : vector<16x1xf32>
    %404 = math.rsqrt %403 : vector<16x1xf32>
    %405 = vector.broadcast %404 : vector<16x1xf32> to vector<16x32xf32>
    %406 = arith.mulf %401, %405 : vector<16x32xf32>
    %407 = vector.broadcast %223 : vector<1x32xf32> to vector<16x32xf32>
    %408 = arith.mulf %406, %407 : vector<16x32xf32>
    %409 = vector.broadcast %224 : vector<1x32xf32> to vector<16x32xf32>
    %410 = arith.addf %408, %409 : vector<16x32xf32>
    %c2_129 = arith.constant 2 : index
    %c0_130 = arith.constant 0 : index
    %c0_131 = arith.constant 0 : index
    %411 = vector.load %arg3[%c2_129, %c0_130, %c0_131] : memref<3x8x128xf32, #tpu.memory_space<vmem>>, vector<1x8x128xf32>
    %412 = vector.shape_cast %411 : vector<1x8x128xf32> to vector<8x128xf32>
    %413 = vector.extract_strided_slice %412 {offsets = [0, 0], sizes = [1, 32], strides = [1, 1]} : vector<8x128xf32> to vector<1x32xf32>
    %414 = vector.extract_strided_slice %412 {offsets = [1, 0], sizes = [1, 32], strides = [1, 1]} : vector<8x128xf32> to vector<1x32xf32>
    %cst_132 = arith.constant dense<0.000000e+00> : vector<16xf32>
    %415 = vector.multi_reduction <add>, %410, %cst_132 [1] : vector<16x32xf32> to vector<16xf32>
    %416 = vector.shape_cast %415 : vector<16xf32> to vector<16x1xf32>
    %cst_133 = arith.constant 3.200000e+01 : f32
    %417 = vector.broadcast %cst_133 : f32 to vector<16x1xf32>
    %418 = arith.divf %416, %417 : vector<16x1xf32>
    %419 = arith.mulf %410, %410 : vector<16x32xf32>
    %cst_134 = arith.constant dense<0.000000e+00> : vector<16xf32>
    %420 = vector.multi_reduction <add>, %419, %cst_134 [1] : vector<16x32xf32> to vector<16xf32>
    %421 = vector.shape_cast %420 : vector<16xf32> to vector<16x1xf32>
    %cst_135 = arith.constant 3.200000e+01 : f32
    %422 = vector.broadcast %cst_135 : f32 to vector<16x1xf32>
    %423 = arith.divf %421, %422 : vector<16x1xf32>
    %424 = arith.mulf %418, %418 : vector<16x1xf32>
    %425 = arith.subf %423, %424 : vector<16x1xf32>
    %426 = vector.broadcast %418 : vector<16x1xf32> to vector<16x32xf32>
    %427 = arith.subf %410, %426 : vector<16x32xf32>
    %cst_136 = arith.constant 9.99999974E-6 : f32
    %428 = vector.broadcast %cst_136 : f32 to vector<16x1xf32>
    %429 = arith.addf %425, %428 : vector<16x1xf32>
    %430 = math.rsqrt %429 : vector<16x1xf32>
    %431 = vector.broadcast %430 : vector<16x1xf32> to vector<16x32xf32>
    %432 = arith.mulf %427, %431 : vector<16x32xf32>
    %433 = vector.broadcast %413 : vector<1x32xf32> to vector<16x32xf32>
    %434 = arith.mulf %432, %433 : vector<16x32xf32>
    %435 = vector.broadcast %414 : vector<1x32xf32> to vector<16x32xf32>
    %436 = arith.addf %434, %435 : vector<16x32xf32>
    %c0_137 = arith.constant 0 : index
    %c0_138 = arith.constant 0 : index
    %437 = vector.load %arg4[%c0_137, %c0_138] : memref<16x32xf32, #tpu.memory_space<vmem>>, vector<16x32xf32>
    tpu.vector_store %arg4[%c0_137, %c0_138], %436 {strides = array<i32>} : memref<16x32xf32, #tpu.memory_space<vmem>>, vector<16x32xf32>,
    return
  }
  func.func @transform_0(%arg0: i32) -> (i32, i32) {
    %c0_i32 = arith.constant 0 : i32
    %c0_i32_0 = arith.constant 0 : i32
    return %arg0, %c0_i32 : i32, i32
  }
  func.func @transform_1(%arg0: i32) -> (i32, i32, i32, i32) {
    %c0_i32 = arith.constant 0 : i32
    %c0_i32_0 = arith.constant 0 : i32
    %c0_i32_1 = arith.constant 0 : i32
    %c0_i32_2 = arith.constant 0 : i32
    %c0_i32_3 = arith.constant 0 : i32
    return %c0_i32, %c0_i32_0, %c0_i32_1, %c0_i32_2 : i32, i32, i32, i32
  }
  func.func @transform_2(%arg0: i32) -> (i32, i32, i32) {
    %c0_i32 = arith.constant 0 : i32
    %c0_i32_0 = arith.constant 0 : i32
    %c0_i32_1 = arith.constant 0 : i32
    %c0_i32_2 = arith.constant 0 : i32
    return %c0_i32, %c0_i32_0, %c0_i32_1 : i32, i32, i32
  }
  func.func @transform_3(%arg0: i32) -> (i32, i32) {
    %c0_i32 = arith.constant 0 : i32
    %c0_i32_0 = arith.constant 0 : i32
    return %arg0, %c0_i32 : i32, i32
  }
}

</mosaic_0001>

<bundles_post_ra>
// kernel: tpu_custom_call.1
= control target key start
LH: loop header
LB: loop body
LE: loop exit
PB: predicated region body
PF: predicated region fallthrough
CT: control target
= control target key end

     0   :  { %8 = vsyncpa [#allocation3], 0  ;;  %s4956_s0 = inlined_call_operand.hbm [shape: f32[16,32], index: 0, kind: input, shape index: {}]   ;;  %s4957_s1 = inlined_call_operand.hbm [shape: f32[2,4,32,128], index: 1, kind: input, shape index: {}]   ;;  %s4958_s2 = inlined_call_operand.hbm [shape: f32[3,8,128], index: 2, kind: input, shape index: {}]   ;;  %s4959_s3 = inlined_call_operand.hbm [shape: f32[16,32], index: 3, kind: output, shape index: {}]  }
   0x1   :  { %9 = vsyncpa [#allocation6], 0 }
   0x2   :  { %10 = vsyncpa [#allocation4], 0  ;;  %s4396_s12 = smov [#allocation5]   ;;  %s4397_s14 = smov [#allocation2]  }
   0x3   :  { %s28_s13 = sshll.u32 %s4396_s12, 4  ;;  %s16_s15 = sshll.u32 %s4397_s14, 4  ;;  %s29_s13 = int_to_ptr.vmem [resolvable:$true] %s28_s13  ;;  %s4437_s15 = int_to_ptr.vmem [resolvable:$true] %s16_s15 }
   0x4   :  { %s4302_s18 = scalar_lea.hbm %s4957_s1, 4096 }
   0x5   :  { %p4303_p0 = scmp.ne.s32.totalorder %s4957_s1, %s4302_s18  ;;  %p4306_p1 = scmp.lt.u32.totalorder %s4302_s18, %s4957_s1 }
   0x7   :  { %p4308_p2 = pnand %p4306_p1, %p4303_p0 }
   0x9   :  { %4311 = shalt.err (!%p4308_p2)
}
   0xa   :  { %s4312_s23 = scalar_lea.vmem %s29_s13, 4096  ;;  %p4317_p4 = scmp.lt.s32.totalorder %s29_s13, %s29_s13 }
   0xb   :  { %p4313_p3 = scmp.ne.s32.totalorder %s29_s13, %s4312_s23  ;;  %p4318_p5 = scmp.lt.s32.totalorder %s4312_s23, %s4312_s23 }
   0xd   :  { %p4319_p6 = por %p4318_p5, %p4317_p4 }
   0xf   :  { %p4320_p7 = pnand %p4319_p6, %p4313_p3 }
  0x11   :  { %4323 = shalt.err (!%p4320_p7)
}
  0x12   :  { %s4398_s24 = smov 128   ;;  %s4399_s25 = smov 8  }
  0x13   :  { %34 = dma.hbm_to_vmem [thread:$0]  %s4957_s1, 4096, %s29_s13, [#allocation6], %s4398_s24, %s4398_s24, %s4399_s25  }
  0x14   :  { %s4324_s30 = scalar_lea.hbm %s4956_s0, 256 }
  0x15   :  { %p4325_p8 = scmp.ne.s32.totalorder %s4956_s0, %s4324_s30  ;;  %p4328_p9 = scmp.lt.u32.totalorder %s4324_s30, %s4956_s0 }
  0x17   :  { %p4330_p10 = pnand %p4328_p9, %p4325_p8 }
  0x19   :  { %4333 = shalt.err (!%p4330_p10)
}
  0x1a   :  { %s4334_s8 = scalar_lea.vmem %s4437_s15, 256  ;;  %p4339_p12 = scmp.lt.s32.totalorder %s4437_s15, %s4437_s15 }
  0x1b   :  { %p4335_p11 = scmp.ne.s32.totalorder %s4437_s15, %s4334_s8  ;;  %p4340_p13 = scmp.lt.s32.totalorder %s4334_s8, %s4334_s8 }
  0x1d   :  { %p4341_p0 = por %p4340_p13, %p4339_p12 }
  0x1f   :  { %p4342_p1 = pnand %p4341_p0, %p4335_p11 }
  0x21   :  { %4345 = shalt.err (!%p4342_p1)
}
  0x22   :  { %22 = dma.hbm_to_vmem [thread:$0]  %s4956_s0, 256, %s4437_s15, [#allocation3], %s4398_s24, %s4398_s24, %s4399_s25  }
  0x23   :  { %s4400_s10 = smov [#allocation7]   ;;  %s4346_s14 = scalar_lea.hbm %s4958_s2, 384 }
  0x24   :  { %s40_s11 = sshll.u32 %s4400_s10, 4  ;;  %p4347_p2 = scmp.ne.s32.totalorder %s4958_s2, %s4346_s14  ;;  %s41_s11 = int_to_ptr.vmem [resolvable:$true] %s40_s11 }
  0x25   :  { %p4350_p3 = scmp.lt.u32.totalorder %s4346_s14, %s4958_s2 }
  0x27   :  { %p4352_p4 = pnand %p4350_p3, %p4347_p2 }
  0x29   :  { %4355 = shalt.err (!%p4352_p4)
}
  0x2a   :  { %s4356_s20 = scalar_lea.vmem %s41_s11, 384  ;;  %p4361_p6 = scmp.lt.s32.totalorder %s41_s11, %s41_s11 }
  0x2b   :  { %p4357_p5 = scmp.ne.s32.totalorder %s41_s11, %s4356_s20  ;;  %p4362_p7 = scmp.lt.s32.totalorder %s4356_s20, %s4356_s20 }
  0x2d   :  { %p4363_p8 = por %p4362_p7, %p4361_p6 }
  0x2f   :  { %p4364_p9 = pnand %p4363_p8, %p4357_p5 }
  0x31   :  { %4367 = shalt.err (!%p4364_p9)
}
  0x32   :  { %46 = dma.hbm_to_vmem [thread:$0]  %s4958_s2, 384, %s41_s11, [#allocation6], %s4398_s24, %s4398_s24, %s4399_s25  }
  0x33   :  { %4390 = dma.done.wait [#allocation3], 256  }
  0x34   :  { %4391 = vsyncadd [#allocation3], 4294967040 }
  0x35   :  { %4392 = dma.done.wait [#allocation6], 4480  }
  0x36   :  { %4393 = vsyncadd [#allocation6], 4294962816  ;;  %vm82_vm0 = vcmask 261120   ;;  %v58_v0 = vld [vmem:[#allocation5] sm:$0xff]  ;;  %v59_v1 = vld [vmem:[#allocation5 + $0x8] sm:$0xff]  ;;  %v4401_v8 = vmov 0.0   ;;  %v78_v9 = vlaneseq }
  0x37   :  { %v60_v2 = vld [vmem:[#allocation5 + $0x10] sm:$0xff]  ;;  %v4133_v3 = vpack.c.bf16 %v59_v1, %v58_v0  ;;  %v61_v4 = vld [vmem:[#allocation5 + $0x18] sm:$0xff]  ;;  %3906 = vmatprep.subr.mxu0 %v4401_v8  ;;  %vm4402_vm1 = vmmov 0   ;;  %v4508_v12 = vld [vmem:[#allocation7] sm:$0xff]  ;;  %s4403_s2 = smov 120   ;;  %s4404_s21 = smov 96  }
  0x38   :  { %v4489_v5 = vld [vmem:[#allocation2] sm:$0xff]  ;;  %v4137_v6 = vpack.c.bf16 %v61_v4, %v60_v2  ;;  %v4493_v7 = vld [vmem:[#allocation2 + $0x8] sm:$0xff]  ;;  %v4499_v10 = vshrl.u32 %v78_v9, 7  ;;  %3908 = vmatprep.mubr.msk.f32.mxu0 %vm4402_vm1, %v4401_v8  ;;  %s4405_s22 = smov 80   ;;  %s4406_s23 = smov 88   ;;  %vm167_vm2 = vcmask 64512  }
  0x39   :  { %3893 = vmatprep.mubr.msk.f32.mxu1 %vm82_vm0, %v4489_v5  ;;  %4134 = vmatprep.subr.bf16.mxu1 %v4133_v3  ;;  %s4407_s26 = smov 72   ;;  %s4408_s27 = smov 112   ;;  %vm837_vm3 = vcmask 130048   ;;  %vm839_vm4 = vcmask 195584  }
  0x3a   :  { %4136 = vmatpush3.bf16.msra.mxu1 %v4133_v3  ;;  %v4506_v11 = vsub.s32 0, %v4499_v10  ;;  %s4409_s28 = smov 104   ;;  %s4410_s29 = smov 56  }
  0x3b   :  { %4138 = vmatprep.subr.bf16.mxu1 %v4137_v6  ;;  %s4411_s30 = smov 64   ;;  %s4412_s4 = smov 40  }
  0x3c   :  { %v81_v13 = vrot.slane %v4508_v12, %v4506_v11  ;;  %s4413_s5 = smov 48   ;;  %s4414_s6 = smov 16  }
  0x3d   :  { %s4415_s7 = smov 24   ;;  %s4416_s8 = smov [#allocation8]  }
  0x3e   :  { %4140 = vmatpush3.bf16.msra.mxu1 %v4137_v6  ;;  %s3700_s1 = sshll.u32 %s4416_s8, 4  ;;  %s3701_s1 = int_to_ptr.vmem [resolvable:$true] %s3700_s1 }
  0x3f   :  { %3896 = vmatprep.subr.mxu1 %v4401_v8  ;;  %s4368_s9 = scalar_lea.vmem %s3701_s1, 256  ;;  %p4373_p11 = scmp.lt.s32.totalorder %s3701_s1, %s3701_s1 }
  0x40   :  { %p4369_p10 = scmp.ne.s32.totalorder %s3701_s1, %s4368_s9  ;;  %p4374_p12 = scmp.lt.s32.totalorder %s4368_s9, %s4368_s9 }
  0x41   :  { %3894 = vmatmul.mubr.msk.f32.vlgmr.msra.gmra.mrb[0].mxu1 %vm82_vm0, %v4493_v7 }
  0x42   :  { %3898 = vmatprep.mubr.msk.f32.mxu1 %vm4402_vm1, %v4401_v8  ;;  %p4375_p13 = por %p4374_p12, %p4373_p11 }
  0x44   :  { %p4376_p0 = pnand %p4375_p13, %p4369_p10 }
 0x114   :  { %v3895_v14 = vpop.f32.mrb[0].mxu1 }
 0x115   :  { %v155_v15 = vpop.f32.mrb[1].mxu1  ;;  %v4526_v17 = vadd.f32 %v3895_v14, %v81_v13 }
 0x116   :  { %v4512_v16 = vadd.f32 %v155_v15, %v81_v13 }
 0x118   :  { %329 = vrot.lane.b32.xlu1 %v4512_v16, %s4403_s2  ;;  %165 = vrot.lane.b32.xlu0 %v4512_v16, %s4404_s21 }
 0x11c   :  { %496 = vrot.lane.b32.xlu1 %v4512_v16, %s4405_s22  ;;  %331 = vrot.lane.b32.xlu0 %v4512_v16, %s4406_s23 }
 0x120   :  { %661 = vrot.lane.b32.xlu1 %v4512_v16, %s4407_s26  ;;  %494 = vrot.lane.b32.xlu0 %v4512_v16, %s4408_s27 }
 0x124   :  { %842 = vrot.lane.b32.xlu1 %v4526_v17, %s4404_s21  ;;  %659 = vrot.lane.b32.xlu0 %v4512_v16, %s4409_s28 }
 0x128   :  { %1005 = vrot.lane.b32.xlu1 %v4526_v17, %s4403_s2  ;;  %1007 = vrot.lane.b32.xlu0 %v4526_v17, %s4406_s23 }
 0x12c   :  { %1170 = vrot.lane.b32.xlu1 %v4526_v17, %s4408_s27  ;;  %1172 = vrot.lane.b32.xlu0 %v4526_v17, %s4405_s22 }
 0x130   :  { %1335 = vrot.lane.b32.xlu1 %v4526_v17, %s4409_s28  ;;  %1337 = vrot.lane.b32.xlu0 %v4526_v17, %s4407_s26 }
 0x134   :  { %418 = vrot.lane.b32.xlu1 %v4512_v16, %s4410_s29  ;;  %253 = vrot.lane.b32.xlu0 %v4512_v16, %s4411_s30 }
 0x18a   :  { %v330_v18 = vpop.permute.xlu1 %329  ;;  %v166_v19 = vpop.permute.xlu0 %165 }
 0x18b   :  { %3897 = vmatpush3.xpose.msk.msra.mxu1 %vm167_vm2, %v166_v19 }
 0x18c   :  { %3901 = vmatprep.subr.mxu1 %v4401_v8 }
 0x18e   :  { %v497_v20 = vpop.permute.xlu1 %496  ;;  %3899 = vmatmul.mubr.msk.f32.vlgmr.msra.gmra.mrb[2].mxu1 %vm167_vm2, %v4512_v16  ;;  %v332_v21 = vpop.permute.xlu0 %331 }
 0x18f   :  { %3907 = vmatpush3.xpose.msk.msra.mxu0 %vm167_vm2, %v332_v21  ;;  %3903 = vmatprep.mubr.msk.f32.mxu1 %vm4402_vm1, %v4401_v8 }
 0x190   :  { %3916 = vmatprep.subr.mxu0 %v4401_v8 }
 0x192   :  { %v662_v22 = vpop.permute.xlu1 %661  ;;  %3909 = vmatmul.mubr.msk.f32.vlgmr.msra.gmra.mrb[0].mxu0 %vm167_vm2, %v330_v18  ;;  %v495_v23 = vpop.permute.xlu0 %494 }
 0x193   :  { %3917 = vmatpush3.xpose.msk.msra.mxu0 %vm167_vm2, %v497_v20  ;;  %3918 = vmatprep.mubr.msk.f32.mxu0 %vm4402_vm1, %v4401_v8 }
 0x194   :  { %3926 = vmatprep.subr.mxu0 %v4401_v8 }
 0x196   :  { %3919 = vmatmul.mubr.msk.f32.vlgmr.msra.gmra.mrb[2].mxu0 %vm167_vm2, %v495_v23  ;;  %v660_v24 = vpop.permute.xlu0 %659  ;;  %v843_v25 = vpop.permute.xlu1 %842 }
 0x197   :  { %3927 = vmatpush3.xpose.msk.msra.mxu0 %vm167_vm2, %v662_v22  ;;  %3928 = vmatprep.mubr.msk.f32.mxu0 %vm4402_vm1, %v4401_v8 }
 0x198   :  { %3936 = vmatprep.subr.mxu0 %v4401_v8 }
 0x19a   :  { %3929 = vmatmul.mubr.msk.f32.vlgmr.msra.gmra.mrb[4].mxu0 %vm167_vm2, %v660_v24  ;;  %v1008_v26 = vpop.permute.xlu0 %1007  ;;  %v1006_v27 = vpop.permute.xlu1 %1005 }
 0x19b   :  { %3937 = vmatpush3.xpose.msk.msra.mxu0 %vm167_vm2, %v843_v25  ;;  %3938 = vmatprep.mubr.msk.f32.mxu0 %vm4402_vm1, %v4401_v8 }
 0x19c   :  { %3946 = vmatprep.subr.mxu0 %v4401_v8 }
 0x19e   :  { %3939 = vmatmul.mubr.msk.f32.vlgmr.msra.gmra.mrb[6].mxu0 %vm167_vm2, %v4526_v17  ;;  %v1173_v28 = vpop.permute.xlu0 %1172  ;;  %v1171_v30 = vpop.permute.xlu1 %1170 }
 0x19f   :  { %3947 = vmatpush3.xpose.msk.msra.mxu0 %vm167_vm2, %v1008_v26  ;;  %3948 = vmatprep.mubr.msk.f32.mxu0 %vm4402_vm1, %v4401_v8 }
 0x1a0   :  { %3956 = vmatprep.subr.mxu0 %v4401_v8 }
 0x1a2   :  { %3949 = vmatmul.mubr.msk.f32.vlgmr.msra.gmra.mrb[8].mxu0 %vm167_vm2, %v1006_v27  ;;  %v1338_v29 = vpop.permute.xlu0 %1337  ;;  %v1336_v32 = vpop.permute.xlu1 %1335 }
 0x1a3   :  { %3957 = vmatpush3.xpose.msk.msra.mxu0 %vm167_vm2, %v1173_v28  ;;  %3958 = vmatprep.mubr.msk.f32.mxu0 %vm4402_vm1, %v4401_v8 }
 0x1a4   :  { %3966 = vmatprep.subr.mxu0 %v4401_v8 }
 0x1a6   :  { %3959 = vmatmul.mubr.msk.f32.vlgmr.msra.gmra.mrb[10].mxu0 %vm167_vm2, %v1171_v30  ;;  %v254_v31 = vpop.permute.xlu0 %253  ;;  %v4600_v57 = vpop.permute.xlu1 %418 }
 0x1a7   :  { %3902 = vmatpush3.msra.mxu1 %v254_v31  ;;  %3967 = vmatpush3.xpose.msk.msra.mxu0 %vm167_vm2, %v1338_v29 }
 0x1a8   :  { %3968 = vmatprep.mubr.msk.f32.mxu0 %vm4402_vm1, %v4401_v8  ;;  %3911 = vmatprep.subr.mxu1 %v4401_v8 }
 0x1aa   :  { %3969 = vmatmul.mubr.msk.f32.vlgmr.msra.gmra.mrb[12].mxu0 %vm167_vm2, %v1336_v32 }
 0x261   :  { %v238_v33 = vpop.f32.mrb[2].mxu1 }
 0x262   :  { %v3900_v34 = vpop.f32.mrb[3].mxu1  ;;  %v242_v35 = vsel %vm167_vm2, %v238_v33, -inf }
 0x263   :  { %243 = vmax.xlane.f32.xlu0 %v242_v35 }
 0x265   :  { %v403_v36 = vpop.f32.mrb[0].mxu0 }
 0x266   :  { %v3910_v37 = vpop.f32.mrb[1].mxu0  ;;  %v407_v38 = vsel %vm167_vm2, %v403_v36, -inf }
 0x267   :  { %408 = vmax.xlane.f32.xlu1 %v407_v38 }
 0x269   :  { %v568_v39 = vpop.f32.mrb[2].mxu0 }
 0x26a   :  { %v3920_v40 = vpop.f32.mrb[3].mxu0  ;;  %v572_v41 = vsel %vm167_vm2, %v568_v39, -inf }
 0x26b   :  { %573 = vmax.xlane.f32.xlu0 %v572_v41 }
 0x26d   :  { %v733_v42 = vpop.f32.mrb[4].mxu0 }
 0x26e   :  { %v3930_v43 = vpop.f32.mrb[5].mxu0  ;;  %v737_v44 = vsel %vm167_vm2, %v733_v42, -inf }
 0x26f   :  { %738 = vmax.xlane.f32.xlu0 %v737_v44 }
 0x271   :  { %v914_v45 = vpop.f32.mrb[6].mxu0 }
 0x272   :  { %v3940_v46 = vpop.f32.mrb[7].mxu0  ;;  %v918_v47 = vsel %vm167_vm2, %v914_v45, -inf }
 0x273   :  { %919 = vmax.xlane.f32.xlu1 %v918_v47 }
 0x275   :  { %v1079_v48 = vpop.f32.mrb[8].mxu0 }
 0x276   :  { %v3950_v49 = vpop.f32.mrb[9].mxu0  ;;  %v1083_v50 = vsel %vm167_vm2, %v1079_v48, -inf }
 0x277   :  { %1084 = vmax.xlane.f32.xlu0 %v1083_v50 }
 0x279   :  { %v1244_v51 = vpop.f32.mrb[10].mxu0 }
 0x27a   :  { %v3960_v52 = vpop.f32.mrb[11].mxu0  ;;  %v1248_v53 = vsel %vm167_vm2, %v1244_v51, -inf }
 0x27b   :  { %1249 = vmax.xlane.f32.xlu1 %v1248_v53 }
 0x27d   :  { %v1409_v54 = vpop.f32.mrb[12].mxu0 }
 0x27e   :  { %v3970_v55 = vpop.f32.mrb[13].mxu0  ;;  %v1413_v56 = vsel %vm167_vm2, %v1409_v54, -inf }
 0x27f   :  { %1414 = vmax.xlane.f32.xlu0 %v1413_v56 }
 0x28c   :  { %748 = vrot.lane.b32.xlu1 %v4512_v16, %s4412_s4 }
 0x295   :  { %583 = vrot.lane.b32.xlu0 %v4512_v16, %s4413_s5 }
 0x2f0   :  { %v244_v58 = vpop.xlane.xlu0 %243 }
 0x2f1   :  { %v245_v59 = vsub.f32 %v238_v33, %v244_v58 }
 0x2f3   :  { %v246_v60 = vmul.f32 1.442695, %v245_v59 }
 0x2f4   :  { %v409_v61 = vpop.xlane.xlu1 %408 }
 0x2f5   :  { %4218 = vpow2.f32 %v246_v60  ;;  %v410_v62 = vsub.f32 %v403_v36, %v409_v61 }
 0x2f7   :  { %v411_v63 = vmul.f32 1.442695, %v410_v62 }
 0x2f8   :  { %v574_v0 = vpop.xlane.xlu0 %573 }
 0x2f9   :  { %4220 = vpow2.f32 %v411_v63  ;;  %v575_v1 = vsub.f32 %v568_v39, %v574_v0 }
 0x2fb   :  { %v576_v2 = vmul.f32 1.442695, %v575_v1 }
 0x2fc   :  { %v739_v3 = vpop.xlane.xlu0 %738 }
 0x2fd   :  { %4222 = vpow2.f32 %v576_v2  ;;  %v740_v4 = vsub.f32 %v733_v42, %v739_v3 }
 0x2ff   :  { %v4219_v6 = vpop.eup %4218  ;;  %v741_v9 = vmul.f32 1.442695, %v740_v4 }
 0x300   :  { %v248_v13 = vsel %vm167_vm2, %v4219_v6, 0.0  ;;  %v920_v21 = vpop.xlane.xlu1 %919 }
 0x301   :  { %4224 = vpow2.f32 %v741_v9  ;;  %249 = vadd.xlane.f32.xlu1 %v248_v13  ;;  %v921_v22 = vsub.f32 %v914_v45, %v920_v21  ;;  %v63_v21 = vld [vmem:[#allocation5 + $0x20] sm:$0xff] }
 0x303   :  { %v4221_v14 = vpop.eup %4220  ;;  %v922_v26 = vmul.f32 1.442695, %v921_v22  ;;  %v64_v22 = vld [vmem:[#allocation5 + $0x28] sm:$0xff] }
 0x304   :  { %v413_v15 = vsel %vm167_vm2, %v4221_v14, 0.0  ;;  %v1085_v23 = vpop.xlane.xlu0 %1084 }
 0x305   :  { %414 = vadd.xlane.f32.xlu0 %v413_v15  ;;  %v1086_v25 = vsub.f32 %v1079_v48, %v1085_v23  ;;  %4226 = vpow2.f32 %v922_v26  ;;  %v4141_v23 = vpack.c.bf16 %v64_v22, %v63_v21 }
 0x307   :  { %v4223_v16 = vpop.eup %4222  ;;  %v1087_v29 = vmul.f32 1.442695, %v1086_v25  ;;  %4142 = vmatprep.subr.bf16.mxu0 %v4141_v23  ;;  %v66_v25 = vld [vmem:[#allocation5 + $0x38] sm:$0xff] }
 0x308   :  { %v578_v18 = vsel %vm167_vm2, %v4223_v16, 0.0  ;;  %v1250_v24 = vpop.xlane.xlu1 %1249  ;;  %4144 = vmatpush3.bf16.msra.mxu0 %v4141_v23 }
 0x309   :  { %579 = vadd.xlane.f32.xlu1 %v578_v18  ;;  %v1251_v27 = vsub.f32 %v1244_v51, %v1250_v24  ;;  %4228 = vpow2.f32 %v1087_v29  ;;  %v65_v24 = vld [vmem:[#allocation5 + $0x30] sm:$0xff] }
 0x30a   :  { %v4145_v26 = vpack.c.bf16 %v66_v25, %v65_v24 }
 0x30b   :  { %v4605_v19 = vpop.eup %4224  ;;  %v1252_v30 = vmul.f32 1.442695, %v1251_v27 }
 0x30c   :  { %v743_v20 = vsel %vm167_vm2, %v4605_v19, 0.0  ;;  %v1415_v28 = vpop.xlane.xlu0 %1414  ;;  %v749_v41 = vpop.permute.xlu1 %748  ;;  %4146 = vmatprep.subr.bf16.mxu0 %v4145_v26 }
 0x30d   :  { %744 = vadd.xlane.f32.xlu0 %v743_v20  ;;  %v1416_v31 = vsub.f32 %v1409_v54, %v1415_v28  ;;  %4230 = vpow2.f32 %v1252_v30  ;;  %4148 = vmatpush3.bf16.msra.mxu0 %v4145_v26 }
 0x30f   :  { %v1417_v32 = vmul.f32 1.442695, %v1416_v31  ;;  %v4227_v33 = vpop.eup %4226 }
 0x310   :  { %v924_v35 = vsel %vm167_vm2, %v4227_v33, 0.0  ;;  %v584_v42 = vpop.permute.xlu0 %583 }
 0x311   :  { %4232 = vpow2.f32 %v1417_v32 }
 0x313   :  { %v4613_v34 = vpop.eup %4228 }
 0x314   :  { %v1089_v38 = vsel %vm167_vm2, %v4613_v34, 0.0 }
 0x317   :  { %v4616_v36 = vpop.eup %4230 }
 0x318   :  { %v1254_v37 = vsel %vm167_vm2, %v4616_v36, 0.0 }
 0x31a   :  { %1094 = vrot.lane.b32.xlu1 %v4526_v17, %s4410_s29 }
 0x31b   :  { %v4622_v39 = vpop.eup %4232 }
 0x31c   :  { %v1419_v40 = vsel %vm167_vm2, %v4622_v39, 0.0 }
 0x323   :  { %929 = vrot.lane.b32.xlu0 %v4526_v17, %s4411_s30 }
 0x33e   :  { %925 = vadd.xlane.f32.xlu1 %v924_v35 }
 0x342   :  { %1255 = vadd.xlane.f32.xlu1 %v1254_v37  ;;  %1090 = vadd.xlane.f32.xlu0 %v1089_v38 }
 0x346   :  { %1420 = vadd.xlane.f32.xlu1 %v1419_v40 }
 0x357   :  { %1424 = vrot.lane.b32.xlu1 %v4526_v17, %s4412_s4 }
 0x358   :  { %1259 = vrot.lane.b32.xlu0 %v4526_v17, %s4413_s5 }
 0x38e   :  { %v250_v43 = vpop.xlane.xlu1 %249 }
 0x38f   :  { %4234 = vrcp.f32 %v250_v43 }
 0x392   :  { %v415_v44 = vpop.xlane.xlu0 %414 }
 0x393   :  { %4236 = vrcp.f32 %v415_v44 }
 0x396   :  { %v580_v45 = vpop.xlane.xlu1 %579 }
 0x397   :  { %4238 = vrcp.f32 %v580_v45 }
 0x399   :  { %v4235_v46 = vpop.eup %4234 }
 0x39a   :  { %v252_v47 = vmul.f32 %v4235_v46, %v4219_v6  ;;  %v745_v48 = vpop.xlane.xlu0 %744  ;;  %v1095_v55 = vpop.permute.xlu1 %1094 }
 0x39b   :  { %4240 = vrcp.f32 %v745_v48 }
 0x39c   :  { %3904 = vmatmul.mubr.msk.f32.vlgmr.msra.gmra.mrb[4].mxu1 %vm167_vm2, %v252_v47  ;;  %v4678_v47 = vsub.s32 1, %v4499_v10 }
 0x39d   :  { %v4237_v49 = vpop.eup %4236  ;;  %3912 = vmatpush3.msra.mxu1 %v4600_v57  ;;  %3913 = vmatprep.mubr.msk.f32.mxu1 %vm4402_vm1, %v4401_v8 }
 0x39e   :  { %v417_v17 = vmul.f32 %v4237_v49, %v4221_v14  ;;  %3921 = vmatprep.subr.mxu1 %v4401_v8  ;;  %v930_v54 = vpop.permute.xlu0 %929  ;;  %v1518_v48 = vrot.slane %v4508_v12, %v4678_v47 }
 0x3a0   :  { %3914 = vmatmul.mubr.msk.f32.vlgmr.msra.gmra.mrb[6].mxu1 %vm167_vm2, %v417_v17 }
 0x3a1   :  { %v4239_v50 = vpop.eup %4238  ;;  %3922 = vmatpush3.msra.mxu1 %v584_v42  ;;  %3923 = vmatprep.mubr.msk.f32.mxu1 %vm4402_vm1, %v4401_v8 }
 0x3a2   :  { %v582_v51 = vmul.f32 %v4239_v50, %v4223_v16  ;;  %3931 = vmatprep.subr.mxu1 %v4401_v8 }
 0x3a4   :  { %3924 = vmatmul.mubr.msk.f32.vlgmr.msra.gmra.mrb[8].mxu1 %vm167_vm2, %v582_v51 }
 0x3a5   :  { %v4241_v52 = vpop.eup %4240  ;;  %3932 = vmatpush3.msra.mxu1 %v749_v41  ;;  %3933 = vmatprep.mubr.msk.f32.mxu1 %vm4402_vm1, %v4401_v8 }
 0x3a6   :  { %v747_v53 = vmul.f32 %v4241_v52, %v4605_v19  ;;  %3941 = vmatprep.subr.mxu1 %v4401_v8 }
 0x3a8   :  { %3934 = vmatmul.mubr.msk.f32.vlgmr.msra.gmra.mrb[10].mxu1 %vm167_vm2, %v747_v53 }
 0x3a9   :  { %3942 = vmatpush3.msra.mxu1 %v930_v54  ;;  %3943 = vmatprep.mubr.msk.f32.mxu1 %vm4402_vm1, %v4401_v8 }
 0x3aa   :  { %3951 = vmatprep.subr.mxu1 %v4401_v8 }
 0x3cb   :  { %v926_v56 = vpop.xlane.xlu1 %925 }
 0x3cc   :  { %4242 = vrcp.f32 %v926_v56 }
 0x3cf   :  { %v1256_v57 = vpop.xlane.xlu1 %1255  ;;  %v1091_v58 = vpop.xlane.xlu0 %1090 }
 0x3d0   :  { %4244 = vrcp.f32 %v1091_v58 }
 0x3d1   :  { %4246 = vrcp.f32 %v1256_v57 }
 0x3d3   :  { %v1421_v59 = vpop.xlane.xlu1 %1420  ;;  %v1260_v1 = vpop.permute.xlu0 %1259 }
 0x3d4   :  { %4248 = vrcp.f32 %v1421_v59 }
 0x3d6   :  { %v4243_v60 = vpop.eup %4242 }
 0x3d7   :  { %v928_v61 = vmul.f32 %v4243_v60, %v4227_v33  ;;  %v1425_v4 = vpop.permute.xlu1 %1424  ;;  %v68_v60 = vld [vmem:[#allocation5 + $0x40] sm:$0xff] }
 0x3d9   :  { %3944 = vmatmul.mubr.msk.f32.vlgmr.msra.gmra.mrb[12].mxu1 %vm167_vm2, %v928_v61  ;;  %v69_v61 = vld [vmem:[#allocation5 + $0x48] sm:$0xff] }
 0x3da   :  { %3952 = vmatpush3.msra.mxu1 %v1095_v55  ;;  %3953 = vmatprep.mubr.msk.f32.mxu1 %vm4402_vm1, %v4401_v8  ;;  %v4245_v62 = vpop.eup %4244 }
 0x3db   :  { %3961 = vmatprep.subr.mxu1 %v4401_v8  ;;  %v1093_v63 = vmul.f32 %v4245_v62, %v4613_v34  ;;  %v4247_v0 = vpop.eup %4246  ;;  %v4149_v62 = vpack.c.bf16 %v69_v61, %v68_v60 }
 0x3dc   :  { %v1258_v2 = vmul.f32 %v4247_v0, %v4616_v36  ;;  %v73_v0 = vld [vmem:[#allocation5 + $0x60] sm:$0xff] }
 0x3dd   :  { %3954 = vmatmul.mubr.msk.f32.vlgmr.msra.gmra.mrb[14].mxu1 %vm167_vm2, %v1093_v63 }
 0x3de   :  { %3962 = vmatpush3.msra.mxu1 %v1260_v1  ;;  %3963 = vmatprep.mubr.msk.f32.mxu1 %vm4402_vm1, %v4401_v8  ;;  %v4249_v3 = vpop.eup %4248  ;;  %v74_v1 = vld [vmem:[#allocation5 + $0x68] sm:$0xff] }
 0x3df   :  { %3971 = vmatprep.subr.mxu1 %v4401_v8  ;;  %v1423_v6 = vmul.f32 %v4249_v3, %v4622_v39  ;;  %v4157_v3 = vpack.c.bf16 %v74_v1, %v73_v0  ;;  %v1858_v0 = vld [vmem:[#allocation5 + $0x90] sm:$0xff]  ;;  %v1859_v1 = vld [vmem:[#allocation5 + $0x98] sm:$0xff] }
 0x3e1   :  { %3964 = vmatmul.mubr.msk.f32.vlgmr.msra.gmra.mrb[16].mxu1 %vm167_vm2, %v1258_v2  ;;  %v75_v2 = vld [vmem:[#allocation5 + $0x70] sm:$0xff]  ;;  %4158 = vmatprep.subr.bf16.mxu0 %v4157_v3 }
 0x3e2   :  { %3972 = vmatpush3.msra.mxu1 %v1425_v4  ;;  %3973 = vmatprep.mubr.msk.f32.mxu1 %vm4402_vm1, %v4401_v8  ;;  %v76_v4 = vld [vmem:[#allocation5 + $0x78] sm:$0xff] }
 0x3e3   :  { %4150 = vmatprep.subr.bf16.mxu1 %v4149_v62 }
 0x3e5   :  { %3974 = vmatmul.mubr.msk.f32.vlgmr.msra.gmra.mrb[18].mxu1 %vm167_vm2, %v1423_v6  ;;  %v4161_v6 = vpack.c.bf16 %v76_v4, %v75_v2  ;;  %v4169_v2 = vpack.c.bf16 %v1859_v1, %v1858_v0 }
 0x3e6   :  { %4152 = vmatpush3.bf16.msra.mxu1 %v4149_v62 }
 0x46f   :  { %v325_v9 = vpop.f32.mrb[4].mxu1 }
 0x470   :  { %v3905_v13 = vpop.f32.mrb[5].mxu1 }
 0x473   :  { %v490_v14 = vpop.f32.mrb[6].mxu1 }
 0x474   :  { %825 = vrot.lane.b32.xlu0 %v490_v14, %s4399_s25  ;;  %v3915_v15 = vpop.f32.mrb[7].mxu1 }
 0x477   :  { %v655_v16 = vpop.f32.mrb[8].mxu1 }
 0x478   :  { %829 = vrot.lane.b32.xlu1 %v655_v16, %s4414_s6  ;;  %v3925_v18 = vpop.f32.mrb[9].mxu1 }
 0x47b   :  { %v820_v19 = vpop.f32.mrb[10].mxu1 }
 0x47c   :  { %833 = vrot.lane.b32.xlu1 %v820_v19, %s4415_s7  ;;  %v3935_v20 = vpop.f32.mrb[11].mxu1 }
 0x4ac   :  { %v1001_v27 = vpop.f32.mrb[12].mxu1 }
 0x4ad   :  { %v3945_v28 = vpop.f32.mrb[13].mxu1 }
 0x4ae   :  { %v1641_v28 = vsub.s32 5, %v4499_v10 }
 0x4b0   :  { %v1166_v29 = vpop.f32.mrb[14].mxu1 }
 0x4b1   :  { %1501 = vrot.lane.b32.xlu0 %v1166_v29, %s4399_s25  ;;  %v3955_v30 = vpop.f32.mrb[15].mxu1 }
 0x4b4   :  { %v1331_v31 = vpop.f32.mrb[16].mxu1 }
 0x4b5   :  { %1505 = vrot.lane.b32.xlu0 %v1331_v31, %s4414_s6  ;;  %v3965_v32 = vpop.f32.mrb[17].mxu1 }
 0x4b8   :  { %v1496_v33 = vpop.f32.mrb[18].mxu1 }
 0x4b9   :  { %1509 = vrot.lane.b32.xlu1 %v1496_v33, %s4415_s7  ;;  %v3975_v34 = vpop.f32.mrb[19].mxu1  ;;  %v1642_v33 = vrot.slane %v4508_v12, %v1641_v28 }
 0x4e6   :  { %v826_v35 = vpop.permute.xlu0 %825 }
 0x4e7   :  { %v836_v37 = vsel %vm167_vm2, %v325_v9, %v826_v35 }
 0x4ea   :  { %v830_v36 = vpop.permute.xlu1 %829 }
 0x4eb   :  { %v838_v38 = vsel %vm837_vm3, %v836_v37, %v830_v36 }
 0x4ee   :  { %v834_v39 = vpop.permute.xlu1 %833 }
 0x4ef   :  { %v840_v40 = vsel %vm839_vm4, %v838_v38, %v834_v39 }
 0x4f0   :  { %3984 = vmatprep.mubr.msk.f32.mxu0 %vm82_vm0, %v840_v40 }
 0x523   :  { %v1502_v41 = vpop.permute.xlu0 %1501 }
 0x524   :  { %v1512_v43 = vsel %vm167_vm2, %v1001_v27, %v1502_v41  ;;  %v1635_v27 = vsub.s32 4, %v4499_v10  ;;  %v1647_v41 = vsub.s32 2, %v4499_v10 }
 0x526   :  { %v1636_v30 = vrot.slane %v4508_v12, %v1635_v27 }
 0x527   :  { %v1506_v42 = vpop.permute.xlu0 %1505 }
 0x528   :  { %v1513_v44 = vsel %vm837_vm3, %v1512_v43, %v1506_v42  ;;  %v1648_v42 = vrot.slane %v4508_v12, %v1647_v41 }
 0x52b   :  { %v1510_v45 = vpop.permute.xlu1 %1509 }
 0x52c   :  { %v1514_v46 = vsel %vm839_vm4, %v1513_v44, %v1510_v45 }
 0x52d   :  { %3985 = vmatmul.mubr.msk.f32.vlgmr.msra.gmra.mrb[14].mxu0 %vm82_vm0, %v1514_v46 }
 0x52e   :  { %4160 = vmatpush3.bf16.xpose.msra.mxu0 %v4157_v3 }
 0x52f   :  { %4162 = vmatprep.subr.bf16.mxu0 %v4161_v6 }
 0x536   :  { %4164 = vmatpush3.bf16.xpose.msra.mxu0 %v4161_v6 }
 0x537   :  { %4030 = vmatprep.subr.mxu0 %v4401_v8 }
 0x600   :  { %v3986_v49 = vpop.f32.mrb[14].mxu0 }
 0x601   :  { %v1597_v17 = vadd.f32 %v3986_v49, %v1518_v48  ;;  %v1591_v50 = vpop.f32.mrb[15].mxu0 }
 0x602   :  { %v1592_v51 = vadd.f32 %v1591_v50, %v1518_v48 }
 0x603   :  { %v1601_v52 = vadd.f32 %v1597_v17, %v4493_v7  ;;  %v71_v7 = vld [vmem:[#allocation5 + $0x58] sm:$0xff]  ;;  %v1734_v17 = vsub.s32 3, %v4499_v10 }
 0x604   :  { %v1600_v53 = vadd.f32 %v1592_v51, %v4489_v5  ;;  %v70_v5 = vld [vmem:[#allocation5 + $0x50] sm:$0xff] }
 0x605   :  { %v1605_v54 = vsel %vm82_vm0, %v1601_v52, 0.0  ;;  %v1612_v58 = vmul.f32 %v1601_v52, %v1601_v52  ;;  %v4153_v63 = vpack.c.bf16 %v71_v7, %v70_v5  ;;  %v1735_v50 = vrot.slane %v4508_v12, %v1734_v17  ;;  %v1856_v5 = vld [vmem:[#allocation5 + $0x80] sm:$0xff]  ;;  %v1857_v7 = vld [vmem:[#allocation5 + $0x88] sm:$0xff] }
 0x606   :  { %1606 = vadd.xlane.f32.xlu1 %v1605_v54  ;;  %v1602_v55 = vsel %vm82_vm0, %v1600_v53, 0.0  ;;  %v1611_v56 = vmul.f32 %v1600_v53, %v1600_v53 }
 0x607   :  { %1603 = vadd.xlane.f32.xlu0 %v1602_v55  ;;  %v1616_v59 = vsel %vm82_vm0, %v1612_v58, 0.0  ;;  %4154 = vmatprep.subr.bf16.mxu1 %v4153_v63 }
 0x608   :  { %v1613_v57 = vsel %vm82_vm0, %v1611_v56, 0.0  ;;  %4156 = vmatpush3.bf16.msra.mxu1 %v4153_v63  ;;  %v4165_v63 = vpack.c.bf16 %v1857_v7, %v1856_v5 }
 0x60a   :  { %4166 = vmatprep.subr.bf16.mxu1 %v4165_v63 }
 0x60b   :  { %1614 = vadd.xlane.f32.xlu0 %v1613_v57 }
 0x60f   :  { %1617 = vadd.xlane.f32.xlu0 %v1616_v59 }
 0x693   :  { %v1607_v14 = vpop.xlane.xlu1 %1606 }
 0x694   :  { %v1604_v9 = vpop.xlane.xlu0 %1603  ;;  %v1610_v16 = vmul.f32 0.03125, %v1607_v14 }
 0x695   :  { %v1609_v13 = vmul.f32 0.03125, %v1604_v9 }
 0x696   :  { %v1622_v22 = vmul.f32 %v1610_v16, %v1610_v16  ;;  %v1626_v34 = vsub.f32 %v1601_v52, %v1610_v16 }
 0x697   :  { %v1621_v18 = vmul.f32 %v1609_v13, %v1609_v13  ;;  %v1625_v29 = vsub.f32 %v1600_v53, %v1609_v13 }
 0x698   :  { %v1615_v15 = vpop.xlane.xlu0 %1614 }
 0x699   :  { %v1619_v19 = vmul.f32 0.03125, %v1615_v15 }
 0x69b   :  { %v1623_v20 = vsub.f32 %v1619_v19, %v1621_v18 }
 0x69c   :  { %v1618_v21 = vpop.xlane.xlu0 %1617 }
 0x69d   :  { %v1627_v23 = vadd.f32 1e-05, %v1623_v20  ;;  %v1620_v24 = vmul.f32 0.03125, %v1618_v21 }
 0x69f   :  { %4250 = vrsqrt.f32 %v1627_v23  ;;  %v1624_v25 = vsub.f32 %v1620_v24, %v1622_v22  ;;  %v1845_v24 = vsub.s32 6, %v4499_v10 }
 0x6a1   :  { %v1628_v26 = vadd.f32 1e-05, %v1624_v25  ;;  %v1851_v25 = vsub.s32 7, %v4499_v10 }
 0x6a3   :  { %4252 = vrsqrt.f32 %v1628_v26 }
 0x6a9   :  { %v4251_v31 = vpop.eup %4250 }
 0x6aa   :  { %v1631_v32 = vmul.f32 %v4251_v31, %v1625_v29  ;;  %v1846_v29 = vrot.slane %v4508_v12, %v1845_v24 }
 0x6ac   :  { %v1637_v35 = vmul.f32 %v1636_v30, %v1631_v32 }
 0x6ad   :  { %v4253_v36 = vpop.eup %4252 }
 0x6ae   :  { %v1632_v37 = vmul.f32 %v4253_v36, %v1626_v34  ;;  %v1643_v38 = vadd.f32 %v1642_v33, %v1637_v35  ;;  %v1852_v35 = vrot.slane %v4508_v12, %v1851_v25 }
 0x6b0   :  { %v1638_v39 = vmul.f32 %v1636_v30, %v1632_v37  ;;  %3995 = vmatprep.mubr.msk.f32.mxu1 %vm82_vm0, %v1643_v38 }
 0x6b2   :  { %v1644_v40 = vadd.f32 %v1642_v33, %v1638_v39 }
 0x6b4   :  { %3996 = vmatmul.mubr.msk.f32.vlgmr.msra.gmra.mrb[20].mxu1 %vm82_vm0, %v1644_v40 }
 0x6b5   :  { %4168 = vmatpush3.bf16.msra.mxu1 %v4165_v63 }
 0x6b6   :  { %4170 = vmatprep.subr.bf16.mxu1 %v4169_v2 }
 0x6b9   :  { %4172 = vmatpush3.bf16.msra.mxu1 %v4169_v2 }
 0x6ba   :  { %4020 = vmatprep.subr.mxu1 %v4401_v8 }
 0x787   :  { %v3997_v43 = vpop.f32.mrb[20].mxu1 }
 0x788   :  { %v1727_v44 = vadd.f32 %v3997_v43, %v1648_v42  ;;  %v1721_v45 = vpop.f32.mrb[21].mxu1 }
 0x789   :  { %v1722_v46 = vadd.f32 %v1721_v45, %v1648_v42 }
 0x78a   :  { %v1731_v49 = vmax.f32 %v1727_v44, 0.0 }
 0x78b   :  { %v1730_v48 = vmax.f32 %v1722_v46, 0.0 }
 0x78d   :  { %4006 = vmatprep.mubr.f32.mxu0 %v1730_v48 }
 0x78e   :  { %4007 = vmatmul.mubr.f32.vlgmr.msra.gmra.mrb[16].mxu0 %v1731_v49 }
 0x78f   :  { %4032 = vmatprep.mubr.msk.f32.mxu0 %vm4402_vm1, %v4401_v8 }
 0x861   :  { %v4008_v51 = vpop.f32.mrb[16].mxu0 }
 0x862   :  { %v1808_v52 = vadd.f32 %v4008_v51, %v1735_v50  ;;  %v1802_v53 = vpop.f32.mrb[17].mxu0 }
 0x863   :  { %v1803_v54 = vadd.f32 %v1802_v53, %v1735_v50 }
 0x864   :  { %v1812_v55 = vadd.f32 %v1808_v52, %v1644_v40  ;;  %v4732_v40 = vld [vmem:[#allocation7 + $0x8] sm:$0xff] }
 0x865   :  { %v1811_v56 = vadd.f32 %v1803_v54, %v1643_v38  ;;  %v1880_v12 = vrot.slane %v4732_v40, %v4506_v11 }
 0x866   :  { %v1816_v57 = vsel %vm82_vm0, %v1812_v55, 0.0  ;;  %v1822_v58 = vmul.f32 %v1812_v55, %v1812_v55 }
 0x867   :  { %1817 = vadd.xlane.f32.xlu0 %v1816_v57  ;;  %v1813_v59 = vsel %vm82_vm0, %v1811_v56, 0.0  ;;  %v1821_v60 = vmul.f32 %v1811_v56, %v1811_v56 }
 0x868   :  { %1814 = vadd.xlane.f32.xlu1 %v1813_v59  ;;  %v1826_v61 = vsel %vm82_vm0, %v1822_v58, 0.0 }
 0x869   :  { %v1823_v62 = vsel %vm82_vm0, %v1821_v60, 0.0 }
 0x86b   :  { %1827 = vadd.xlane.f32.xlu0 %v1826_v61 }
 0x86c   :  { %1824 = vadd.xlane.f32.xlu1 %v1823_v62 }
 0x8f4   :  { %v1818_v3 = vpop.xlane.xlu0 %1817 }
 0x8f5   :  { %v1820_v4 = vmul.f32 0.03125, %v1818_v3  ;;  %v1815_v6 = vpop.xlane.xlu1 %1814 }
 0x8f6   :  { %v1819_v9 = vmul.f32 0.03125, %v1815_v6 }
 0x8f7   :  { %v1832_v14 = vmul.f32 %v1820_v4, %v1820_v4  ;;  %v1836_v26 = vsub.f32 %v1812_v55, %v1820_v4 }
 0x8f8   :  { %v1828_v13 = vpop.xlane.xlu0 %1827  ;;  %v1831_v18 = vmul.f32 %v1819_v9, %v1819_v9  ;;  %v1835_v31 = vsub.f32 %v1811_v56, %v1819_v9 }
 0x8f9   :  { %v1830_v15 = vmul.f32 0.03125, %v1828_v13  ;;  %v1825_v16 = vpop.xlane.xlu1 %1824 }
 0x8fa   :  { %v1829_v19 = vmul.f32 0.03125, %v1825_v16 }
 0x8fb   :  { %v1834_v20 = vsub.f32 %v1830_v15, %v1832_v14 }
 0x8fc   :  { %v1833_v21 = vsub.f32 %v1829_v19, %v1831_v18 }
 0x8fd   :  { %v1838_v22 = vadd.f32 1e-05, %v1834_v20 }
 0x8fe   :  { %v1837_v23 = vadd.f32 1e-05, %v1833_v21 }
 0x8ff   :  { %4254 = vrsqrt.f32 %v1838_v22 }
 0x900   :  { %4256 = vrsqrt.f32 %v1837_v23 }
 0x909   :  { %v4255_v30 = vpop.eup %4254 }
 0x90a   :  { %v4257_v32 = vpop.eup %4256  ;;  %v1842_v33 = vmul.f32 %v4255_v30, %v1836_v26 }
 0x90b   :  { %v1841_v34 = vmul.f32 %v4257_v32, %v1835_v31 }
 0x90c   :  { %v1848_v36 = vmul.f32 %v1846_v29, %v1842_v33 }
 0x90d   :  { %v1847_v37 = vmul.f32 %v1846_v29, %v1841_v34 }
 0x90e   :  { %v4724_v39 = vadd.f32 %v1852_v35, %v1848_v36 }
 0x90f   :  { %v4722_v38 = vadd.f32 %v1852_v35, %v1847_v37 }
 0x911   :  { %4017 = vmatprep.mubr.msk.f32.mxu1 %vm82_vm0, %v4722_v38 }
 0x912   :  { %4018 = vmatmul.mubr.msk.f32.vlgmr.msra.gmra.mrb[22].mxu1 %vm82_vm0, %v4724_v39 }
 0x913   :  { %4022 = vmatprep.mubr.msk.f32.mxu1 %vm4402_vm1, %v4401_v8 }
 0x9e5   :  { %v4019_v42 = vpop.f32.mrb[22].mxu1 }
 0x9e6   :  { %v1953_v43 = vpop.f32.mrb[23].mxu1  ;;  %v4750_v45 = vadd.f32 %v4019_v42, %v1880_v12 }
 0x9e7   :  { %v4736_v44 = vadd.f32 %v1953_v43, %v1880_v12 }
 0x9e9   :  { %2128 = vrot.lane.b32.xlu0 %v4736_v44, %s4406_s23  ;;  %1963 = vrot.lane.b32.xlu1 %v4736_v44, %s4404_s21 }
 0x9ed   :  { %2291 = vrot.lane.b32.xlu0 %v4736_v44, %s4408_s27  ;;  %2126 = vrot.lane.b32.xlu1 %v4736_v44, %s4403_s2 }
 0x9f1   :  { %2456 = vrot.lane.b32.xlu0 %v4736_v44, %s4409_s28  ;;  %2293 = vrot.lane.b32.xlu1 %v4736_v44, %s4405_s22 }
 0x9f5   :  { %2802 = vrot.lane.b32.xlu0 %v4750_v45, %s4406_s23  ;;  %2458 = vrot.lane.b32.xlu1 %v4736_v44, %s4407_s26 }
 0x9f9   :  { %2967 = vrot.lane.b32.xlu0 %v4750_v45, %s4405_s22  ;;  %2637 = vrot.lane.b32.xlu1 %v4750_v45, %s4404_s21 }
 0x9fd   :  { %3132 = vrot.lane.b32.xlu0 %v4750_v45, %s4407_s26  ;;  %2800 = vrot.lane.b32.xlu1 %v4750_v45, %s4403_s2 }
 0xa01   :  { %2050 = vrot.lane.b32.xlu0 %v4736_v44, %s4411_s30  ;;  %2965 = vrot.lane.b32.xlu1 %v4750_v45, %s4408_s27 }
 0xa05   :  { %3130 = vrot.lane.b32.xlu1 %v4750_v45, %s4409_s28 }
 0xa09   :  { %2215 = vrot.lane.b32.xlu1 %v4736_v44, %s4410_s29 }
 0xa5b   :  { %v2129_v46 = vpop.permute.xlu0 %2128  ;;  %v1964_v48 = vpop.permute.xlu1 %1963 }
 0xa5c   :  { %4021 = vmatpush3.xpose.msk.msra.mxu1 %vm167_vm2, %v1964_v48  ;;  %4031 = vmatpush3.xpose.msk.msra.mxu0 %vm167_vm2, %v2129_v46 }
 0xa5d   :  { %4040 = vmatprep.subr.mxu0 %v4401_v8  ;;  %4025 = vmatprep.subr.mxu1 %v4401_v8 }
 0xa5f   :  { %v2292_v49 = vpop.permute.xlu0 %2291  ;;  %4023 = vmatmul.mubr.msk.f32.vlgmr.msra.gmra.mrb[24].mxu1 %vm167_vm2, %v4736_v44  ;;  %v2127_v50 = vpop.permute.xlu1 %2126 }
 0xa60   :  { %4033 = vmatmul.mubr.msk.f32.vlgmr.msra.gmra.mrb[18].mxu0 %vm167_vm2, %v2127_v50  ;;  %4027 = vmatprep.mubr.msk.f32.mxu1 %vm4402_vm1, %v4401_v8 }
 0xa61   :  { %4042 = vmatprep.mubr.msk.f32.mxu0 %vm4402_vm1, %v4401_v8 }
 0xa63   :  { %v2457_v51 = vpop.permute.xlu0 %2456  ;;  %v2294_v52 = vpop.permute.xlu1 %2293 }
 0xa64   :  { %4041 = vmatpush3.xpose.msk.msra.mxu0 %vm167_vm2, %v2294_v52 }
 0xa65   :  { %4050 = vmatprep.subr.mxu0 %v4401_v8 }
 0xa67   :  { %v2803_v53 = vpop.permute.xlu0 %2802  ;;  %4043 = vmatmul.mubr.msk.f32.vlgmr.msra.gmra.mrb[20].mxu0 %vm167_vm2, %v2292_v49  ;;  %v2459_v54 = vpop.permute.xlu1 %2458 }
 0xa68   :  { %4051 = vmatpush3.xpose.msk.msra.mxu0 %vm167_vm2, %v2459_v54  ;;  %4052 = vmatprep.mubr.msk.f32.mxu0 %vm4402_vm1, %v4401_v8 }
 0xa69   :  { %4060 = vmatprep.subr.mxu0 %v4401_v8 }
 0xa6b   :  { %v2968_v55 = vpop.permute.xlu0 %2967  ;;  %4053 = vmatmul.mubr.msk.f32.vlgmr.msra.gmra.mrb[22].mxu0 %vm167_vm2, %v2457_v51  ;;  %v2638_v56 = vpop.permute.xlu1 %2637 }
 0xa6c   :  { %4061 = vmatpush3.xpose.msk.msra.mxu0 %vm167_vm2, %v2638_v56  ;;  %4062 = vmatprep.mubr.msk.f32.mxu0 %vm4402_vm1, %v4401_v8 }
 0xa6d   :  { %4070 = vmatprep.subr.mxu0 %v4401_v8 }
 0xa6f   :  { %v3133_v57 = vpop.permute.xlu0 %3132  ;;  %4063 = vmatmul.mubr.msk.f32.vlgmr.msra.gmra.mrb[24].mxu0 %vm167_vm2, %v4750_v45  ;;  %v2801_v58 = vpop.permute.xlu1 %2800 }
 0xa70   :  { %4071 = vmatpush3.xpose.msk.msra.mxu0 %vm167_vm2, %v2803_v53  ;;  %4072 = vmatprep.mubr.msk.f32.mxu0 %vm4402_vm1, %v4401_v8 }
 0xa71   :  { %4080 = vmatprep.subr.mxu0 %v4401_v8 }
 0xa73   :  { %v2051_v59 = vpop.permute.xlu0 %2050  ;;  %4073 = vmatmul.mubr.msk.f32.vlgmr.msra.gmra.mrb[26].mxu0 %vm167_vm2, %v2801_v58  ;;  %v2966_v60 = vpop.permute.xlu1 %2965 }
 0xa74   :  { %4026 = vmatpush3.msra.mxu1 %v2051_v59  ;;  %4081 = vmatpush3.xpose.msk.msra.mxu0 %vm167_vm2, %v2968_v55 }
 0xa75   :  { %4082 = vmatprep.mubr.msk.f32.mxu0 %vm4402_vm1, %v4401_v8  ;;  %4090 = vmatprep.subr.mxu0 %v4401_v8 }
 0xa76   :  { %4035 = vmatprep.subr.mxu1 %v4401_v8 }
 0xa77   :  { %4083 = vmatmul.mubr.msk.f32.vlgmr.msra.gmra.mrb[28].mxu0 %vm167_vm2, %v2966_v60  ;;  %v3131_v61 = vpop.permute.xlu1 %3130 }
 0xa78   :  { %4091 = vmatpush3.xpose.msk.msra.mxu0 %vm167_vm2, %v3133_v57  ;;  %4092 = vmatprep.mubr.msk.f32.mxu0 %vm4402_vm1, %v4401_v8 }
 0xa7b   :  { %4093 = vmatmul.mubr.msk.f32.vlgmr.msra.gmra.mrb[30].mxu0 %vm167_vm2, %v3131_v61  ;;  %v4824_v31 = vpop.permute.xlu1 %2215 }
 0xb32   :  { %v2035_v62 = vpop.f32.mrb[24].mxu1 }
 0xb33   :  { %v4024_v5 = vpop.f32.mrb[25].mxu1  ;;  %v2200_v7 = vpop.f32.mrb[18].mxu0  ;;  %v2039_v63 = vsel %vm167_vm2, %v2035_v62, -inf }
 0xb34   :  { %2040 = vmax.xlane.f32.xlu0 %v2039_v63  ;;  %v4034_v0 = vpop.f32.mrb[19].mxu0  ;;  %v2204_v1 = vsel %vm167_vm2, %v2200_v7, -inf }
 0xb35   :  { %2205 = vmax.xlane.f32.xlu1 %v2204_v1 }
 0xb3a   :  { %v2365_v2 = vpop.f32.mrb[20].mxu0 }
 0xb3b   :  { %v4044_v3 = vpop.f32.mrb[21].mxu0  ;;  %v2369_v4 = vsel %vm167_vm2, %v2365_v2, -inf }
 0xb3c   :  { %2370 = vmax.xlane.f32.xlu0 %v2369_v4 }
 0xb3e   :  { %v2530_v6 = vpop.f32.mrb[22].mxu0 }
 0xb3f   :  { %v4054_v9 = vpop.f32.mrb[23].mxu0  ;;  %v2534_v13 = vsel %vm167_vm2, %v2530_v6, -inf }
 0xb40   :  { %2535 = vmax.xlane.f32.xlu0 %v2534_v13 }
 0xb42   :  { %v2709_v14 = vpop.f32.mrb[24].mxu0 }
 0xb43   :  { %v4064_v15 = vpop.f32.mrb[25].mxu0  ;;  %v2713_v16 = vsel %vm167_vm2, %v2709_v14, -inf }
 0xb44   :  { %2714 = vmax.xlane.f32.xlu1 %v2713_v16 }
 0xb46   :  { %v2874_v18 = vpop.f32.mrb[26].mxu0 }
 0xb47   :  { %v4074_v19 = vpop.f32.mrb[27].mxu0  ;;  %v2878_v20 = vsel %vm167_vm2, %v2874_v18, -inf }
 0xb48   :  { %2879 = vmax.xlane.f32.xlu0 %v2878_v20 }
 0xb4a   :  { %v3039_v21 = vpop.f32.mrb[28].mxu0 }
 0xb4b   :  { %v4084_v22 = vpop.f32.mrb[29].mxu0  ;;  %v3043_v23 = vsel %vm167_vm2, %v3039_v21, -inf }
 0xb4c   :  { %3044 = vmax.xlane.f32.xlu1 %v3043_v23 }
 0xb4e   :  { %v3204_v26 = vpop.f32.mrb[30].mxu0 }
 0xb4f   :  { %v4094_v29 = vpop.f32.mrb[31].mxu0  ;;  %v3208_v30 = vsel %vm167_vm2, %v3204_v26, -inf }
 0xb50   :  { %3209 = vmax.xlane.f32.xlu0 %v3208_v30 }
 0xb5d   :  { %2545 = vrot.lane.b32.xlu1 %v4736_v44, %s4412_s4 }
 0xb66   :  { %2380 = vrot.lane.b32.xlu0 %v4736_v44, %s4413_s5 }
 0xbc1   :  { %v2041_v32 = vpop.xlane.xlu0 %2040 }
 0xbc2   :  { %v2042_v33 = vsub.f32 %v2035_v62, %v2041_v32  ;;  %v2206_v34 = vpop.xlane.xlu1 %2205 }
 0xbc3   :  { %v2207_v35 = vsub.f32 %v2200_v7, %v2206_v34 }
 0xbc4   :  { %v2043_v36 = vmul.f32 1.442695, %v2042_v33 }
 0xbc5   :  { %v2208_v37 = vmul.f32 1.442695, %v2207_v35 }
 0xbc6   :  { %4258 = vpow2.f32 %v2043_v36 }
 0xbc7   :  { %4260 = vpow2.f32 %v2208_v37 }
 0xbc9   :  { %v2371_v12 = vpop.xlane.xlu0 %2370 }
 0xbca   :  { %v2372_v42 = vsub.f32 %v2365_v2, %v2371_v12 }
 0xbcc   :  { %v2373_v43 = vmul.f32 1.442695, %v2372_v42 }
 0xbcd   :  { %v2536_v46 = vpop.xlane.xlu0 %2535 }
 0xbce   :  { %4262 = vpow2.f32 %v2373_v43  ;;  %v2537_v48 = vsub.f32 %v2530_v6, %v2536_v46 }
 0xbd0   :  { %v4259_v49 = vpop.eup %4258  ;;  %v2538_v50 = vmul.f32 1.442695, %v2537_v48 }
 0xbd1   :  { %v4261_v51 = vpop.eup %4260  ;;  %v2045_v44 = vsel %vm167_vm2, %v4259_v49, 0.0  ;;  %v2715_v57 = vpop.xlane.xlu1 %2714 }
 0xbd2   :  { %4264 = vpow2.f32 %v2538_v50  ;;  %2046 = vadd.xlane.f32.xlu1 %v2045_v44  ;;  %v2210_v52 = vsel %vm167_vm2, %v4261_v51, 0.0  ;;  %v2716_v58 = vsub.f32 %v2709_v14, %v2715_v57 }
 0xbd3   :  { %2211 = vadd.xlane.f32.xlu0 %v2210_v52 }
 0xbd4   :  { %v2717_v62 = vmul.f32 1.442695, %v2716_v58 }
 0xbd5   :  { %v2880_v59 = vpop.xlane.xlu0 %2879 }
 0xbd6   :  { %v2881_v61 = vsub.f32 %v2874_v18, %v2880_v59  ;;  %4266 = vpow2.f32 %v2717_v62 }
 0xbd8   :  { %v4263_v53 = vpop.eup %4262  ;;  %v2882_v63 = vmul.f32 1.442695, %v2881_v61 }
 0xbd9   :  { %v2375_v54 = vsel %vm167_vm2, %v4263_v53, 0.0  ;;  %v3045_v60 = vpop.xlane.xlu1 %3044 }
 0xbda   :  { %2376 = vadd.xlane.f32.xlu1 %v2375_v54  ;;  %v3046_v5 = vsub.f32 %v3039_v21, %v3045_v60  ;;  %4268 = vpow2.f32 %v2882_v63 }
 0xbdc   :  { %v4829_v55 = vpop.eup %4264  ;;  %v3047_v0 = vmul.f32 1.442695, %v3046_v5 }
 0xbdd   :  { %v2540_v56 = vsel %vm167_vm2, %v4829_v55, 0.0  ;;  %v3210_v7 = vpop.xlane.xlu0 %3209  ;;  %v2546_v18 = vpop.permute.xlu1 %2545 }
 0xbde   :  { %2541 = vadd.xlane.f32.xlu0 %v2540_v56  ;;  %v3211_v1 = vsub.f32 %v3204_v26, %v3210_v7  ;;  %4270 = vpow2.f32 %v3047_v0  ;;  %v1861_v7 = vld [vmem:[#allocation5 + $0xa0] sm:$0xff]  ;;  %v1863_v0 = vld [vmem:[#allocation5 + $0xb0] sm:$0xff] }
 0xbe0   :  { %v3212_v2 = vmul.f32 1.442695, %v3211_v1  ;;  %v4267_v3 = vpop.eup %4266  ;;  %v1864_v1 = vld [vmem:[#allocation5 + $0xb8] sm:$0xff] }
 0xbe1   :  { %v2719_v6 = vsel %vm167_vm2, %v4267_v3, 0.0  ;;  %v2381_v19 = vpop.permute.xlu0 %2380 }
 0xbe2   :  { %4272 = vpow2.f32 %v3212_v2  ;;  %v4177_v2 = vpack.c.bf16 %v1864_v1, %v1863_v0 }
 0xbe4   :  { %v4837_v4 = vpop.eup %4268 }
 0xbe5   :  { %v2884_v13 = vsel %vm167_vm2, %v4837_v4, 0.0 }
 0xbe8   :  { %v4840_v9 = vpop.eup %4270 }
 0xbe9   :  { %v3049_v14 = vsel %vm167_vm2, %v4840_v9, 0.0 }
 0xbeb   :  { %2889 = vrot.lane.b32.xlu1 %v4750_v45, %s4410_s29 }
 0xbec   :  { %v4846_v15 = vpop.eup %4272 }
 0xbed   :  { %v3214_v16 = vsel %vm167_vm2, %v4846_v15, 0.0 }
 0xbf4   :  { %2724 = vrot.lane.b32.xlu0 %v4750_v45, %s4411_s30 }
 0xc0f   :  { %2720 = vadd.xlane.f32.xlu1 %v2719_v6 }
 0xc13   :  { %2885 = vadd.xlane.f32.xlu0 %v2884_v13  ;;  %3050 = vadd.xlane.f32.xlu1 %v3049_v14 }
 0xc17   :  { %3215 = vadd.xlane.f32.xlu1 %v3214_v16 }
 0xc28   :  { %3219 = vrot.lane.b32.xlu1 %v4750_v45, %s4412_s4 }
 0xc29   :  { %3054 = vrot.lane.b32.xlu0 %v4750_v45, %s4413_s5 }
 0xc5f   :  { %v2047_v20 = vpop.xlane.xlu1 %2046 }
 0xc60   :  { %4274 = vrcp.f32 %v2047_v20  ;;  %v2212_v21 = vpop.xlane.xlu0 %2211 }
 0xc61   :  { %4276 = vrcp.f32 %v2212_v21 }
 0xc67   :  { %v2377_v22 = vpop.xlane.xlu1 %2376 }
 0xc68   :  { %4278 = vrcp.f32 %v2377_v22 }
 0xc6a   :  { %v4275_v23 = vpop.eup %4274 }
 0xc6b   :  { %v2049_v26 = vmul.f32 %v4275_v23, %v4259_v49  ;;  %v2542_v29 = vpop.xlane.xlu0 %2541  ;;  %v4277_v30 = vpop.eup %4276 }
 0xc6c   :  { %4280 = vrcp.f32 %v2542_v29  ;;  %v2214_v45 = vmul.f32 %v4277_v30, %v4261_v51  ;;  %v2890_v36 = vpop.permute.xlu1 %2889 }
 0xc6d   :  { %4028 = vmatmul.mubr.msk.f32.vlgmr.msra.gmra.mrb[26].mxu1 %vm167_vm2, %v2049_v26 }
 0xc6e   :  { %4036 = vmatpush3.msra.mxu1 %v4824_v31  ;;  %4037 = vmatprep.mubr.msk.f32.mxu1 %vm4402_vm1, %v4401_v8 }
 0xc6f   :  { %4045 = vmatprep.subr.mxu1 %v4401_v8  ;;  %v2725_v35 = vpop.permute.xlu0 %2724 }
 0xc71   :  { %4038 = vmatmul.mubr.msk.f32.vlgmr.msra.gmra.mrb[28].mxu1 %vm167_vm2, %v2214_v45 }
 0xc72   :  { %v4279_v32 = vpop.eup %4278  ;;  %4046 = vmatpush3.msra.mxu1 %v2381_v19  ;;  %4047 = vmatprep.mubr.msk.f32.mxu1 %vm4402_vm1, %v4401_v8 }
 0xc73   :  { %v2379_v33 = vmul.f32 %v4279_v32, %v4263_v53  ;;  %4055 = vmatprep.subr.mxu1 %v4401_v8 }
 0xc75   :  { %4048 = vmatmul.mubr.msk.f32.vlgmr.msra.gmra.mrb[30].mxu1 %vm167_vm2, %v2379_v33 }
 0xc76   :  { %v4281_v34 = vpop.eup %4280  ;;  %4056 = vmatpush3.msra.mxu1 %v2546_v18  ;;  %4057 = vmatprep.mubr.msk.f32.mxu1 %vm4402_vm1, %v4401_v8 }
 0xc77   :  { %v2544_v31 = vmul.f32 %v4281_v34, %v4829_v55  ;;  %4065 = vmatprep.subr.mxu1 %v4401_v8  ;;  %v3313_v34 = vrot.slane %v4732_v40, %v4678_v47 }
 0xc79   :  { %4058 = vmatmul.mubr.msk.f32.vlgmr.msra.gmra.mrb[32].mxu1 %vm167_vm2, %v2544_v31 }
 0xc7a   :  { %4066 = vmatpush3.msra.mxu1 %v2725_v35  ;;  %4067 = vmatprep.mubr.msk.f32.mxu1 %vm4402_vm1, %v4401_v8 }
 0xc7b   :  { %4075 = vmatprep.subr.mxu1 %v4401_v8 }
 0xc9c   :  { %v2721_v37 = vpop.xlane.xlu1 %2720 }
 0xc9d   :  { %4282 = vrcp.f32 %v2721_v37 }
 0xca0   :  { %v2886_v12 = vpop.xlane.xlu0 %2885  ;;  %v3051_v42 = vpop.xlane.xlu1 %3050 }
 0xca1   :  { %4284 = vrcp.f32 %v2886_v12 }
 0xca2   :  { %4286 = vrcp.f32 %v3051_v42 }
 0xca4   :  { %v3216_v43 = vpop.xlane.xlu1 %3215  ;;  %v3055_v44 = vpop.permute.xlu0 %3054 }
 0xca5   :  { %4288 = vrcp.f32 %v3216_v43 }
 0xca7   :  { %v4283_v46 = vpop.eup %4282 }
 0xca8   :  { %v2723_v48 = vmul.f32 %v4283_v46, %v4267_v3  ;;  %v3220_v54 = vpop.permute.xlu1 %3219 }
 0xcaa   :  { %4068 = vmatmul.mubr.msk.f32.vlgmr.msra.gmra.mrb[34].mxu1 %vm167_vm2, %v2723_v48 }
 0xcab   :  { %v4285_v49 = vpop.eup %4284  ;;  %4076 = vmatpush3.msra.mxu1 %v2890_v36  ;;  %4077 = vmatprep.mubr.msk.f32.mxu1 %vm4402_vm1, %v4401_v8 }
 0xcac   :  { %v2888_v50 = vmul.f32 %v4285_v49, %v4837_v4  ;;  %4085 = vmatprep.subr.mxu1 %v4401_v8  ;;  %v4287_v51 = vpop.eup %4286 }
 0xcad   :  { %v3053_v52 = vmul.f32 %v4287_v51, %v4840_v9 }
 0xcae   :  { %4078 = vmatmul.mubr.msk.f32.vlgmr.msra.gmra.mrb[36].mxu1 %vm167_vm2, %v2888_v50 }
 0xcaf   :  { %4086 = vmatpush3.msra.mxu1 %v3055_v44  ;;  %4087 = vmatprep.mubr.msk.f32.mxu1 %vm4402_vm1, %v4401_v8  ;;  %v4289_v53 = vpop.eup %4288  ;;  %v1866_v44 = vld [vmem:[#allocation5 + $0xc0] sm:$0xff] }
 0xcb0   :  { %4095 = vmatprep.subr.mxu1 %v4401_v8  ;;  %v3218_v55 = vmul.f32 %v4289_v53, %v4846_v15 }
 0xcb2   :  { %4088 = vmatmul.mubr.msk.f32.vlgmr.msra.gmra.mrb[38].mxu1 %vm167_vm2, %v3053_v52  ;;  %v1867_v52 = vld [vmem:[#allocation5 + $0xc8] sm:$0xff] }
 0xcb3   :  { %4096 = vmatpush3.msra.mxu1 %v3220_v54  ;;  %4097 = vmatprep.mubr.msk.f32.mxu1 %vm4402_vm1, %v4401_v8  ;;  %v1862_v8 = vld [vmem:[#allocation5 + $0xa8] sm:$0xff]  ;;  %v4181_v53 = vpack.c.bf16 %v1867_v52, %v1866_v44 }
 0xcb4   :  { %v4173_v63 = vpack.c.bf16 %v1862_v8, %v1861_v7 }
 0xcb5   :  { %4182 = vmatprep.subr.bf16.mxu1 %v4181_v53 }
 0xcb6   :  { %4098 = vmatmul.mubr.msk.f32.vlgmr.msra.gmra.mrb[40].mxu1 %vm167_vm2, %v3218_v55  ;;  %4174 = vmatprep.subr.bf16.mxu0 %v4173_v63  ;;  %v1871_v55 = vld [vmem:[#allocation5 + $0xe0] sm:$0xff] }
 0xcb7   :  { %4176 = vmatpush3.bf16.msra.mxu0 %v4173_v63  ;;  %4184 = vmatpush3.bf16.msra.mxu1 %v4181_v53 }
 0xcb8   :  { %4178 = vmatprep.subr.bf16.mxu0 %v4177_v2 }
 0xcbb   :  { %4180 = vmatpush3.bf16.msra.mxu0 %v4177_v2 }
 0xd40   :  { %v2122_v56 = vpop.f32.mrb[26].mxu1 }
 0xd41   :  { %v4029_v57 = vpop.f32.mrb[27].mxu1 }
 0xd42   :  { %v1873_v57 = vld [vmem:[#allocation5 + $0xf0] sm:$0xff] }
 0xd44   :  { %v2287_v58 = vpop.f32.mrb[28].mxu1 }
 0xd45   :  { %2622 = vrot.lane.b32.xlu0 %v2287_v58, %s4399_s25  ;;  %v4039_v59 = vpop.f32.mrb[29].mxu1 }
 0xd46   :  { %v1874_v59 = vld [vmem:[#allocation5 + $0xf8] sm:$0xff] }
 0xd48   :  { %v2452_v60 = vpop.f32.mrb[30].mxu1 }
 0xd49   :  { %2626 = vrot.lane.b32.xlu1 %v2452_v60, %s4414_s6  ;;  %v4049_v61 = vpop.f32.mrb[31].mxu1  ;;  %v4193_v60 = vpack.c.bf16 %v1874_v59, %v1873_v57 }
 0xd4c   :  { %v2617_v62 = vpop.f32.mrb[32].mxu1 }
 0xd4d   :  { %2630 = vrot.lane.b32.xlu1 %v2617_v62, %s4415_s7  ;;  %v4059_v5 = vpop.f32.mrb[33].mxu1 }
 0xd7d   :  { %v2796_v3 = vpop.f32.mrb[34].mxu1 }
 0xd7e   :  { %v4069_v4 = vpop.f32.mrb[35].mxu1 }
 0xd81   :  { %v2961_v6 = vpop.f32.mrb[36].mxu1 }
 0xd82   :  { %3296 = vrot.lane.b32.xlu0 %v2961_v6, %s4399_s25  ;;  %v4079_v9 = vpop.f32.mrb[37].mxu1 }
 0xd85   :  { %v3126_v13 = vpop.f32.mrb[38].mxu1 }
 0xd86   :  { %3300 = vrot.lane.b32.xlu0 %v3126_v13, %s4414_s6  ;;  %v4089_v14 = vpop.f32.mrb[39].mxu1 }
 0xd89   :  { %v3291_v15 = vpop.f32.mrb[40].mxu1 }
 0xd8a   :  { %3304 = vrot.lane.b32.xlu1 %v3291_v15, %s4415_s7  ;;  %v4099_v16 = vpop.f32.mrb[41].mxu1  ;;  %v3430_v15 = vrot.slane %v4732_v40, %v1635_v27  ;;  %v3442_v27 = vrot.slane %v4732_v40, %v1647_v41 }
 0xdb7   :  { %v2623_v18 = vpop.permute.xlu0 %2622 }
 0xdb8   :  { %v2633_v20 = vsel %vm167_vm2, %v2122_v56, %v2623_v18  ;;  %v1872_v56 = vld [vmem:[#allocation5 + $0xe8] sm:$0xff] }
 0xdb9   :  { %v4189_v58 = vpack.c.bf16 %v1872_v56, %v1871_v55 }
 0xdbb   :  { %v2627_v19 = vpop.permute.xlu1 %2626  ;;  %4190 = vmatprep.subr.bf16.mxu0 %v4189_v58 }
 0xdbc   :  { %v2634_v21 = vsel %vm837_vm3, %v2633_v20, %v2627_v19  ;;  %v3436_v19 = vrot.slane %v4732_v40, %v1641_v28 }
 0xdbf   :  { %v2631_v22 = vpop.permute.xlu1 %2630 }
 0xdc0   :  { %v2635_v23 = vsel %vm839_vm4, %v2634_v21, %v2631_v22 }
 0xdc1   :  { %4108 = vmatprep.mubr.msk.f32.mxu0 %vm82_vm0, %v2635_v23 }
 0xdf4   :  { %v3297_v26 = vpop.permute.xlu0 %3296 }
 0xdf5   :  { %v3307_v30 = vsel %vm167_vm2, %v2796_v3, %v3297_v26 }
 0xdf8   :  { %v3301_v29 = vpop.permute.xlu0 %3300 }
 0xdf9   :  { %v3308_v45 = vsel %vm837_vm3, %v3307_v30, %v3301_v29 }
 0xdfc   :  { %v3305_v32 = vpop.permute.xlu1 %3304 }
 0xdfd   :  { %v3309_v33 = vsel %vm839_vm4, %v3308_v45, %v3305_v32 }
 0xdfe   :  { %4109 = vmatmul.mubr.msk.f32.vlgmr.msra.gmra.mrb[32].mxu0 %vm82_vm0, %v3309_v33 }
 0xdff   :  { %4192 = vmatpush3.bf16.xpose.msra.mxu0 %v4189_v58 }
 0xe00   :  { %4194 = vmatprep.subr.bf16.mxu0 %v4193_v60 }
 0xe07   :  { %4196 = vmatpush3.bf16.xpose.msra.mxu0 %v4193_v60 }
 0xed1   :  { %v4110_v31 = vpop.f32.mrb[32].mxu0 }
 0xed2   :  { %v3392_v35 = vadd.f32 %v4110_v31, %v3313_v34  ;;  %v3386_v36 = vpop.f32.mrb[33].mxu0 }
 0xed3   :  { %v3387_v37 = vadd.f32 %v3386_v36, %v3313_v34 }
 0xed4   :  { %v3396_v12 = vadd.f32 %v3392_v35, %v4724_v39  ;;  %v1869_v39 = vld [vmem:[#allocation5 + $0xd8] sm:$0xff]  ;;  %v3529_v35 = vrot.slane %v4732_v40, %v1734_v17 }
 0xed5   :  { %v3395_v42 = vadd.f32 %v3387_v37, %v4722_v38  ;;  %v1868_v38 = vld [vmem:[#allocation5 + $0xd0] sm:$0xff] }
 0xed6   :  { %v3400_v43 = vsel %vm82_vm0, %v3396_v12, 0.0  ;;  %v3406_v50 = vmul.f32 %v3396_v12, %v3396_v12  ;;  %v4185_v54 = vpack.c.bf16 %v1869_v39, %v1868_v38 }
 0xed7   :  { %3401 = vadd.xlane.f32.xlu1 %v3400_v43  ;;  %v3397_v46 = vsel %vm82_vm0, %v3395_v42, 0.0  ;;  %v3405_v48 = vmul.f32 %v3395_v42, %v3395_v42 }
 0xed8   :  { %3398 = vadd.xlane.f32.xlu0 %v3397_v46  ;;  %v3410_v51 = vsel %vm82_vm0, %v3406_v50, 0.0  ;;  %4186 = vmatprep.subr.bf16.mxu1 %v4185_v54 }
 0xed9   :  { %v3407_v49 = vsel %vm82_vm0, %v3405_v48, 0.0  ;;  %4188 = vmatpush3.bf16.msra.mxu1 %v4185_v54 }
 0xedc   :  { %3408 = vadd.xlane.f32.xlu0 %v3407_v49 }
 0xee0   :  { %3411 = vadd.xlane.f32.xlu0 %v3410_v51 }
 0xf64   :  { %v3402_v5 = vpop.xlane.xlu1 %3401 }
 0xf65   :  { %v3399_v61 = vpop.xlane.xlu0 %3398  ;;  %v3404_v8 = vmul.f32 0.03125, %v3402_v5 }
 0xf66   :  { %v3403_v62 = vmul.f32 0.03125, %v3399_v61 }
 0xf67   :  { %v3416_v3 = vmul.f32 %v3404_v8, %v3404_v8  ;;  %v3420_v20 = vsub.f32 %v3396_v12, %v3404_v8 }
 0xf68   :  { %v3415_v63 = vmul.f32 %v3403_v62, %v3403_v62  ;;  %v3419_v14 = vsub.f32 %v3395_v42, %v3403_v62 }
 0xf69   :  { %v3409_v7 = vpop.xlane.xlu0 %3408 }
 0xf6a   :  { %v3413_v0 = vmul.f32 0.03125, %v3409_v7  ;;  %v3640_v7 = vrot.slane %v4732_v40, %v1845_v24 }
 0xf6c   :  { %v3417_v1 = vsub.f32 %v3413_v0, %v3415_v63 }
 0xf6d   :  { %v3412_v2 = vpop.xlane.xlu0 %3411 }
 0xf6e   :  { %v3421_v4 = vadd.f32 1e-05, %v3417_v1  ;;  %v3414_v6 = vmul.f32 0.03125, %v3412_v2  ;;  %v3646_v2 = vrot.slane %v4732_v40, %v1851_v25 }
 0xf70   :  { %4290 = vrsqrt.f32 %v3421_v4  ;;  %v3418_v9 = vsub.f32 %v3414_v6, %v3416_v3 }
 0xf72   :  { %v3422_v13 = vadd.f32 1e-05, %v3418_v9 }
 0xf74   :  { %4292 = vrsqrt.f32 %v3422_v13 }
 0xf7a   :  { %v4291_v16 = vpop.eup %4290 }
 0xf7b   :  { %v3425_v18 = vmul.f32 %v4291_v16, %v3419_v14 }
 0xf7d   :  { %v3431_v21 = vmul.f32 %v3430_v15, %v3425_v18 }
 0xf7e   :  { %v4293_v22 = vpop.eup %4292 }
 0xf7f   :  { %v3426_v23 = vmul.f32 %v4293_v22, %v3420_v20  ;;  %v3437_v26 = vadd.f32 %v3436_v19, %v3431_v21 }
 0xf81   :  { %v3432_v29 = vmul.f32 %v3430_v15, %v3426_v23  ;;  %4119 = vmatprep.mubr.msk.f32.mxu1 %vm82_vm0, %v3437_v26 }
 0xf83   :  { %v3438_v30 = vadd.f32 %v3436_v19, %v3432_v29 }
 0xf85   :  { %4120 = vmatmul.mubr.msk.f32.vlgmr.msra.gmra.mrb[42].mxu1 %vm82_vm0, %v3438_v30 }
0x1058   :  { %v4121_v45 = vpop.f32.mrb[42].mxu1 }
0x1059   :  { %v3521_v32 = vadd.f32 %v4121_v45, %v3442_v27  ;;  %v3515_v33 = vpop.f32.mrb[43].mxu1 }
0x105a   :  { %v3516_v34 = vadd.f32 %v3515_v33, %v3442_v27 }
0x105b   :  { %v3525_v31 = vmax.f32 %v3521_v32, 0.0 }
0x105c   :  { %v3524_v28 = vmax.f32 %v3516_v34, 0.0  ;;  %v3650_v34 = vld [vmem:[#allocation7 + $0x10] sm:$0xff] }
0x105e   :  { %4130 = vmatprep.mubr.f32.mxu0 %v3524_v28 }
0x105f   :  { %4131 = vmatmul.mubr.f32.vlgmr.msra.gmra.mrb[34].mxu0 %v3525_v31  ;;  %v3684_v31 = vrot.slane %v3650_v34, %v4506_v11 }
0x1132   :  { %v4132_v36 = vpop.f32.mrb[34].mxu0 }
0x1133   :  { %v3602_v37 = vadd.f32 %v4132_v36, %v3529_v35  ;;  %v3596_v12 = vpop.f32.mrb[35].mxu0 }
0x1134   :  { %v3597_v42 = vadd.f32 %v3596_v12, %v3529_v35 }
0x1135   :  { %v3606_v43 = vadd.f32 %v3602_v37, %v3438_v30 }
0x1136   :  { %v3605_v46 = vadd.f32 %v3597_v42, %v3437_v26  ;;  %v3690_v42 = vrot.slane %v3650_v34, %v4678_v47 }
0x1137   :  { %v3610_v41 = vsel %vm82_vm0, %v3606_v43, 0.0  ;;  %v3616_v48 = vmul.f32 %v3606_v43, %v3606_v43 }
0x1138   :  { %3611 = vadd.xlane.f32.xlu0 %v3610_v41  ;;  %v3607_v49 = vsel %vm82_vm0, %v3605_v46, 0.0  ;;  %v3615_v50 = vmul.f32 %v3605_v46, %v3605_v46 }
0x1139   :  { %3608 = vadd.xlane.f32.xlu1 %v3607_v49  ;;  %v3620_v51 = vsel %vm82_vm0, %v3616_v48, 0.0 }
0x113a   :  { %v3617_v44 = vsel %vm82_vm0, %v3615_v50, 0.0 }
0x113c   :  { %3621 = vadd.xlane.f32.xlu0 %v3620_v51 }
0x113d   :  { %3618 = vadd.xlane.f32.xlu1 %v3617_v44 }
0x11c5   :  { %v3612_v17 = vpop.xlane.xlu0 %3611 }
0x11c6   :  { %v3614_v52 = vmul.f32 0.03125, %v3612_v17  ;;  %v3609_v53 = vpop.xlane.xlu1 %3608 }
0x11c7   :  { %v3613_v38 = vmul.f32 0.03125, %v3609_v53 }
0x11c8   :  { %v3626_v54 = vmul.f32 %v3614_v52, %v3614_v52  ;;  %v3630_v5 = vsub.f32 %v3606_v43, %v3614_v52 }
0x11c9   :  { %v3622_v39 = vpop.xlane.xlu0 %3621  ;;  %v3625_v57 = vmul.f32 %v3613_v38, %v3613_v38  ;;  %v3629_v63 = vsub.f32 %v3605_v46, %v3613_v38 }
0x11ca   :  { %v3624_v55 = vmul.f32 0.03125, %v3622_v39  ;;  %v3619_v56 = vpop.xlane.xlu1 %3618 }
0x11cb   :  { %v3623_v58 = vmul.f32 0.03125, %v3619_v56 }
0x11cc   :  { %v3628_v59 = vsub.f32 %v3624_v55, %v3626_v54 }
0x11cd   :  { %v3627_v60 = vsub.f32 %v3623_v58, %v3625_v57 }
0x11ce   :  { %v3632_v61 = vadd.f32 1e-05, %v3628_v59 }
0x11cf   :  { %v3631_v62 = vadd.f32 1e-05, %v3627_v60 }
0x11d0   :  { %4294 = vrsqrt.f32 %v3632_v61 }
0x11d1   :  { %4296 = vrsqrt.f32 %v3631_v62 }
0x11da   :  { %v4295_v8 = vpop.eup %4294 }
0x11db   :  { %v4297_v0 = vpop.eup %4296  ;;  %v3636_v1 = vmul.f32 %v4295_v8, %v3630_v5 }
0x11dc   :  { %v3635_v3 = vmul.f32 %v4297_v0, %v3629_v63 }
0x11dd   :  { %v3642_v4 = vmul.f32 %v3640_v7, %v3636_v1 }
0x11de   :  { %v3641_v6 = vmul.f32 %v3640_v7, %v3635_v3 }
0x11df   :  { %v3648_v9 = vadd.f32 %v3646_v2, %v3642_v4 }
0x11e0   :  { %v3647_v13 = vadd.f32 %v3646_v2, %v3641_v6 }
0x11e1   :  { %v3654_v14 = vsel %vm82_vm0, %v3648_v9, 0.0  ;;  %v3660_v15 = vmul.f32 %v3648_v9, %v3648_v9 }
0x11e2   :  { %3655 = vadd.xlane.f32.xlu0 %v3654_v14  ;;  %v3651_v16 = vsel %vm82_vm0, %v3647_v13, 0.0  ;;  %v3659_v24 = vmul.f32 %v3647_v13, %v3647_v13 }
0x11e3   :  { %3652 = vadd.xlane.f32.xlu1 %v3651_v16  ;;  %v3664_v18 = vsel %vm82_vm0, %v3660_v15, 0.0 }
0x11e4   :  { %v3661_v10 = vsel %vm82_vm0, %v3659_v24, 0.0 }
0x11e6   :  { %3665 = vadd.xlane.f32.xlu0 %v3664_v18 }
0x11e7   :  { %3662 = vadd.xlane.f32.xlu1 %v3661_v10 }
0x126f   :  { %v3656_v25 = vpop.xlane.xlu0 %3655 }
0x1270   :  { %v3658_v40 = vmul.f32 0.03125, %v3656_v25  ;;  %v3653_v19 = vpop.xlane.xlu1 %3652 }
0x1271   :  { %v3657_v20 = vmul.f32 0.03125, %v3653_v19 }
0x1272   :  { %v3670_v22 = vmul.f32 %v3658_v40, %v3658_v40  ;;  %v3674_v28 = vsub.f32 %v3648_v9, %v3658_v40 }
0x1273   :  { %v3666_v21 = vpop.xlane.xlu0 %3665  ;;  %v3669_v29 = vmul.f32 %v3657_v20, %v3657_v20  ;;  %v3673_v36 = vsub.f32 %v3647_v13, %v3657_v20 }
0x1274   :  { %v3668_v23 = vmul.f32 0.03125, %v3666_v21  ;;  %v3663_v26 = vpop.xlane.xlu1 %3662 }
0x1275   :  { %v3667_v30 = vmul.f32 0.03125, %v3663_v26 }
0x1276   :  { %v3672_v27 = vsub.f32 %v3668_v23, %v3670_v22 }
0x1277   :  { %v3671_v45 = vsub.f32 %v3667_v30, %v3669_v29 }
0x1278   :  { %v3676_v32 = vadd.f32 1e-05, %v3672_v27 }
0x1279   :  { %v3675_v33 = vadd.f32 1e-05, %v3671_v45 }
0x127a   :  { %4298 = vrsqrt.f32 %v3676_v32 }
0x127b   :  { %4300 = vrsqrt.f32 %v3675_v33 }
0x1284   :  { %v4299_v35 = vpop.eup %4298 }
0x1285   :  { %v4301_v37 = vpop.eup %4300  ;;  %v3680_v12 = vmul.f32 %v4299_v35, %v3674_v28 }
0x1286   :  { %v3679_v43 = vmul.f32 %v4301_v37, %v3673_v36 }
0x1287   :  { %v3686_v46 = vmul.f32 %v3684_v31, %v3680_v12 }
0x1288   :  { %v3685_v41 = vmul.f32 %v3684_v31, %v3679_v43 }
0x1289   :  { %v3692_v48 = vadd.f32 %v3690_v42, %v3686_v46 }
0x128a   :  { %v3691_v49 = vadd.f32 %v3690_v42, %v3685_v41 }
0x128b   :  { %3694 = vst.msk [vmem:[#allocation8 + $0x8] sm:$0xff] %vm82_vm0, %v3692_v48 }
0x128c   :  { %3693 = vst.msk [vmem:[#allocation8] sm:$0xff] %vm82_vm0, %v3691_v49 }
0x128d   :  { %4379 = shalt.err (!%p4376_p0)
}
0x128e   :  { %s4380_s12 = scalar_lea.hbm %s4959_s3, 256 }
0x128f   :  { %p4381_p1 = scmp.ne.s32.totalorder %s4959_s3, %s4380_s12  ;;  %p4384_p2 = scmp.lt.u32.totalorder %s4380_s12, %s4959_s3 }
0x1291   :  { %p4386_p3 = pnand %p4384_p2, %p4381_p1 }
0x1293   :  { %4389 = shalt.err (!%p4386_p3)
}
0x1294   :  { %3706 = dma.vmem_to_hbm [thread:$0]  %s3701_s1, 256, %s4959_s3, [#allocation4], %s4398_s24, %s4398_s24, %s4399_s25  }
0x1295   :  { %4394 = dma.done.wait [#allocation4], 256  }
0x1296   :  { %4395 = vsyncadd [#allocation4], 4294967040 }
0x1297   :  { %3710 = vsyncpa [#allocation3], 1 }
0x1298   :  { %3711 = vsyncpa [#allocation6], 1 }
0x1299   :  { %3712 = vsyncpa [#allocation4], 1 }

</bundles_post_ra>
